<compile_context>
chip_gen: v7x
topology: tpu7x:2x2x1
jax: 0.10.0
libtpu: 0.0.40
codegen_flags: <defaults>
</compile_context>

<pallas_src>
import functools

import jax
import jax.numpy as jnp
from jax import lax
from jax.experimental import pallas as pl
from jax.experimental.pallas import tpu as pltpu
import numpy as np


# ----------------------------- Pallas kernel ------------------------------ #
def _bottleneck_kernel(x_ref, w1_ref, w2_ref, w3_ref,
                       b1_ref, b2_ref, b3_ref, o_ref, *, H, W):
    B, HW, Cin = x_ref.shape              # (B, H*W, Cin), bf16
    P = w1_ref.shape[1]

    x = x_ref[...]                        # bf16
    x2d = x.reshape(B * HW, Cin)          # merge leading dims (layout no-op)

    # conv1 (1x1, BN scale folded into w1) + bias + relu  -- MXU matmul
    t1 = jnp.dot(x2d, w1_ref[...], preferred_element_type=jnp.float32)
    t1 = jnp.maximum(t1 + b1_ref[...], 0.0)              # (B*HW, P) f32

    # conv2 (3x3, stride=1, pad=1) as ONE im2col matmul with K = 9*P.
    # Build the zero-padded activation as a value (no VMEM scratch round-trip).
    t1_4d = t1.reshape(B, H, W, P)
    zrow = jnp.zeros((B, 1, W, P), jnp.float32)
    zcol = jnp.zeros((B, H + 2, 1, P), jnp.float32)
    t1_pad = jnp.concatenate([zrow, t1_4d, zrow], axis=1)
    t1_pad = jnp.concatenate([zcol, t1_pad, zcol], axis=2)   # (B, H+2, W+2, P)
    cols = jnp.concatenate(
        [t1_pad[:, dy:dy + H, dx:dx + W, :]
         for dy in range(3) for dx in range(3)],
        axis=-1)                                             # (B, H, W, 9P)
    cols = cols.reshape(B * HW, 9 * P).astype(w2_ref.dtype)  # bf16 for the MXU
    t2 = jnp.dot(cols, w2_ref[...], preferred_element_type=jnp.float32)
    t2 = jnp.maximum(t2 + b2_ref[...], 0.0)                  # (B*HW, P) f32

    # conv3 (1x1) + bias + residual + relu
    t3 = jnp.dot(t2.astype(w3_ref.dtype), w3_ref[...],
                 preferred_element_type=jnp.float32)
    t3 = jnp.maximum(t3 + b3_ref[...] + x2d.astype(jnp.float32), 0.0)

    o_ref[...] = t3.reshape(B, HW, 4 * P).astype(o_ref.dtype)


# ------------------------------- wrapper ----------------------------------- #
def _pick_block_n(n, hw, target_rows=1024):
    """Largest divisor of n whose block gives at most ~target_rows matmul rows."""
    bn = max(1, min(n, target_rows // max(hw, 1)))
    while n % bn:
        bn -= 1
    return bn


def bottleneck_forward(x_nchw, w1, w2, w3, s1, b1, s2, b2, s3, b3,
                       *, block_n=None):
    """x_nchw: (N, Cin, H, W) with Cin == 4 * out_planes.  Returns NCHW f32."""
    N, Cin, H, W = x_nchw.shape
    P = w1.shape[1]
    assert Cin == 4 * P, "residual add requires in_planes == out_planes * 4"
    HW = H * W
    if block_n is None:
        block_n = _pick_block_n(N, HW)
    assert N % block_n == 0

    # NCHW -> (N, H*W, C) rows, bf16 (single fused transpose+cast pass).
    x_rows = jnp.transpose(x_nchw, (0, 2, 3, 1)).reshape(N, HW, Cin)
    x_rows = x_rows.astype(jnp.bfloat16)

    # Fold BN (inference) scales into the conv weights; pass only biases.
    w1f = (w1 * s1[None, :]).astype(jnp.bfloat16)              # (Cin, P)
    w2f = (w2 * s2).reshape(9 * P, P).astype(jnp.bfloat16)     # im2col (9P, P)
    w3f = (w3 * s3[None, :]).astype(jnp.bfloat16)              # (P, 4P)
    b1r = b1.reshape(1, P).astype(jnp.float32)
    b2r = b2.reshape(1, P).astype(jnp.float32)
    b3r = b3.reshape(1, 4 * P).astype(jnp.float32)

    kernel = functools.partial(_bottleneck_kernel, H=H, W=W)

    out_rows = pl.pallas_call(
        kernel,
        out_shape=jax.ShapeDtypeStruct((N, HW, 4 * P), jnp.bfloat16),
        grid_spec=pltpu.PrefetchScalarGridSpec(
            num_scalar_prefetch=0,
            grid=(N // block_n,),
            in_specs=[
                pl.BlockSpec((block_n, HW, Cin), lambda n: (n, 0, 0)),
                pl.BlockSpec((Cin, P), lambda n: (0, 0)),
                pl.BlockSpec((9 * P, P), lambda n: (0, 0)),
                pl.BlockSpec((P, 4 * P), lambda n: (0, 0)),
                pl.BlockSpec((1, P), lambda n: (0, 0)),
                pl.BlockSpec((1, P), lambda n: (0, 0)),
                pl.BlockSpec((1, 4 * P), lambda n: (0, 0)),
            ],
            out_specs=pl.BlockSpec((block_n, HW, 4 * P), lambda n: (n, 0, 0)),
        ),
        compiler_params=pltpu.CompilerParams(
            dimension_semantics=("parallel",)),
    )(x_rows, w1f, w2f, w3f, b1r, b2r, b3r)

    # (N, H*W, 4P) -> NCHW, back to f32.
    out = out_rows.reshape(N, H, W, 4 * P)
    return jnp.transpose(out, (0, 3, 1, 2)).astype(jnp.float32)


# ------------------------- pure-JAX reference (f32) ------------------------ #
def bottleneck_ref(x_nchw, w1, w2, w3, s1, b1, s2, b2, s3, b3):
    x = jnp.transpose(x_nchw, (0, 2, 3, 1)).astype(jnp.float32)   # NHWC
    t = jnp.einsum('nhwc,cp->nhwp', x, w1)
    t = jnp.maximum(t * s1 + b1, 0.0)
    t = lax.conv_general_dilated(t, w2, window_strides=(1, 1), padding='SAME',
                                 dimension_numbers=('NHWC', 'HWIO', 'NHWC'))
    t = jnp.maximum(t * s2 + b2, 0.0)
    t = jnp.einsum('nhwp,pq->nhwq', t, w3)
    t = jnp.maximum(t * s3 + b3 + x, 0.0)
    return jnp.transpose(t, (0, 3, 1, 2))


# --------------------------------- main ------------------------------------ #
if __name__ == "__main__":
    # Small shapes consistent with Bottleneck(in_planes=32, out_planes=8)
    N, P, H, W = 2, 8, 8, 8
    Cin = 4 * P            # 32, required for the identity residual path

    key = jax.random.PRNGKey(0)
    ks = jax.random.split(key, 16)

    # Conv weights: (Cin, P) for 1x1, HWIO (3,3,P,P) for 3x3, (P, 4P) for 1x1.
    w1 = 0.05 * jax.random.normal(ks[0], (Cin, P), jnp.float32)
    w2 = 0.05 * jax.random.normal(ks[1], (3, 3, P, P), jnp.float32)
    w3 = 0.05 * jax.random.normal(ks[2], (P, 4 * P), jnp.float32)

    # BatchNorm (inference mode) params folded to scale/bias: y = x*s + b.
    eps = 1e-5
    def fold_bn(kg, kb, km, kv, c):
        gamma = 1.0 + 0.1 * jax.random.normal(kg, (c,), jnp.float32)
        beta = 0.1 * jax.random.normal(kb, (c,), jnp.float32)
        rmean = 0.1 * jax.random.normal(km, (c,), jnp.float32)
        rvar = 1.0 + 0.1 * jax.random.uniform(kv, (c,), jnp.float32)
        s = gamma / jnp.sqrt(rvar + eps)
        b = beta - rmean * s
        return s, b

    s1, b1 = fold_bn(ks[3], ks[4], ks[5], ks[6], P)
    s2, b2 = fold_bn(ks[7], ks[8], ks[9], ks[10], P)
    s3, b3 = fold_bn(ks[11], ks[12], ks[13], ks[14], 4 * P)

    x = jax.random.normal(ks[15], (N, Cin, H, W), jnp.float32)

    out = bottleneck_forward(x, w1, w2, w3, s1, b1, s2, b2, s3, b3)
    out = jax.block_until_ready(out)

    ref = bottleneck_ref(x, w1, w2, w3, s1, b1, s2, b2, s3, b3)
    # bf16 activations/weights (f32 accumulation) -> relaxed tolerance.
    np.testing.assert_allclose(np.asarray(out), np.asarray(ref),
                               rtol=4e-2, atol=4e-2)
    print("KERNEL_OK")
</pallas_src>

<mosaic_0001>
module attributes {stable_mosaic.version = 11 : i64} {
  func.func @_bottleneck_kernel(%arg0: i32, %arg1: memref<2x64x32xbf16, #tpu.memory_space<vmem>>, %arg2: memref<32x8xbf16, #tpu.memory_space<vmem>>, %arg3: memref<72x8xbf16, #tpu.memory_space<vmem>>, %arg4: memref<8x32xbf16, #tpu.memory_space<vmem>>, %arg5: memref<1x8xf32, #tpu.memory_space<vmem>>, %arg6: memref<1x8xf32, #tpu.memory_space<vmem>>, %arg7: memref<1x32xf32, #tpu.memory_space<vmem>>, %arg8: memref<2x64x32xbf16, #tpu.memory_space<vmem>>) attributes {dimension_semantics = [#tpu.dimension_semantics<parallel>], iteration_bounds = array<i64: 1>, scalar_prefetch = 0 : i64, scratch_operands = 0 : i64, tpu.core_type = #tpu.core_type<tc>, window_params = [{transform_indices = @transform_0, window_bounds = array<i64: 2, 64, 32>}, {pipeline_mode = #tpu.pipeline_mode<synchronous>, transform_indices = @transform_1, window_bounds = array<i64: 32, 8>}, {pipeline_mode = #tpu.pipeline_mode<synchronous>, transform_indices = @transform_2, window_bounds = array<i64: 72, 8>}, {pipeline_mode = #tpu.pipeline_mode<synchronous>, transform_indices = @transform_3, window_bounds = array<i64: 8, 32>}, {pipeline_mode = #tpu.pipeline_mode<synchronous>, transform_indices = @transform_4, window_bounds = array<i64: 1, 8>}, {pipeline_mode = #tpu.pipeline_mode<synchronous>, transform_indices = @transform_5, window_bounds = array<i64: 1, 8>}, {pipeline_mode = #tpu.pipeline_mode<synchronous>, transform_indices = @transform_6, window_bounds = array<i64: 1, 32>}, {transform_indices = @transform_7, window_bounds = array<i64: 2, 64, 32>}]} {
    %c0 = arith.constant 0 : index
    %c0_0 = arith.constant 0 : index
    %c0_1 = arith.constant 0 : index
    %0 = vector.load %arg1[%c0, %c0_0, %c0_1] : memref<2x64x32xbf16, #tpu.memory_space<vmem>>, vector<2x64x32xbf16>
    %1 = vector.shape_cast %0 : vector<2x64x32xbf16> to vector<128x32xbf16>
    %c0_2 = arith.constant 0 : index
    %c0_3 = arith.constant 0 : index
    %2 = vector.load %arg2[%c0_2, %c0_3] : memref<32x8xbf16, #tpu.memory_space<vmem>>, vector<32x8xbf16>
    %cst = arith.constant dense<0.000000e+00> : vector<128x8xf32>
    %3 = tpu.matmul %1, %2, %cst {dimension_numbers = #tpu.dot_dimension_numbers<[1], [0], [0], [1], [0, 0, 1, 1], [], []>} : vector<128x32xbf16>, vector<32x8xbf16>, vector<128x8xf32> -> vector<128x8xf32>
    %c0_4 = arith.constant 0 : index
    %c0_5 = arith.constant 0 : index
    %4 = vector.load %arg5[%c0_4, %c0_5] : memref<1x8xf32, #tpu.memory_space<vmem>>, vector<1x8xf32>
    %5 = vector.broadcast %4 : vector<1x8xf32> to vector<128x8xf32>
    %6 = arith.addf %3, %5 : vector<128x8xf32>
    %cst_6 = arith.constant 0.000000e+00 : f32
    %7 = vector.broadcast %cst_6 : f32 to vector<128x8xf32>
    %8 = arith.maximumf %6, %7 : vector<128x8xf32>
    %9 = vector.shape_cast %8 : vector<128x8xf32> to vector<2x8x8x8xf32>
    %cst_7 = arith.constant 0.000000e+00 : f32
    %10 = vector.broadcast %cst_7 : f32 to vector<2x1x8x8xf32>
    %cst_8 = arith.constant 0.000000e+00 : f32
    %11 = vector.broadcast %cst_8 : f32 to vector<2x10x1x8xf32>
    %12 = tpu.concatenate %10, %9, %10 in 1 : vector<2x1x8x8xf32>, vector<2x8x8x8xf32>, vector<2x1x8x8xf32> -> vector<2x10x8x8xf32>
    %13 = tpu.concatenate %11, %12, %11 in 2 : vector<2x10x1x8xf32>, vector<2x10x8x8xf32>, vector<2x10x1x8xf32> -> vector<2x10x10x8xf32>
    %14 = vector.extract_strided_slice %13 {offsets = [0, 0, 0, 0], sizes = [2, 8, 8, 8], strides = [1, 1, 1, 1]} : vector<2x10x10x8xf32> to vector<2x8x8x8xf32>
    %15 = vector.extract_strided_slice %13 {offsets = [0, 0, 1, 0], sizes = [2, 8, 8, 8], strides = [1, 1, 1, 1]} : vector<2x10x10x8xf32> to vector<2x8x8x8xf32>
    %16 = vector.extract_strided_slice %13 {offsets = [0, 0, 2, 0], sizes = [2, 8, 8, 8], strides = [1, 1, 1, 1]} : vector<2x10x10x8xf32> to vector<2x8x8x8xf32>
    %17 = vector.extract_strided_slice %13 {offsets = [0, 1, 0, 0], sizes = [2, 8, 8, 8], strides = [1, 1, 1, 1]} : vector<2x10x10x8xf32> to vector<2x8x8x8xf32>
    %18 = vector.extract_strided_slice %13 {offsets = [0, 1, 1, 0], sizes = [2, 8, 8, 8], strides = [1, 1, 1, 1]} : vector<2x10x10x8xf32> to vector<2x8x8x8xf32>
    %19 = vector.extract_strided_slice %13 {offsets = [0, 1, 2, 0], sizes = [2, 8, 8, 8], strides = [1, 1, 1, 1]} : vector<2x10x10x8xf32> to vector<2x8x8x8xf32>
    %20 = vector.extract_strided_slice %13 {offsets = [0, 2, 0, 0], sizes = [2, 8, 8, 8], strides = [1, 1, 1, 1]} : vector<2x10x10x8xf32> to vector<2x8x8x8xf32>
    %21 = vector.extract_strided_slice %13 {offsets = [0, 2, 1, 0], sizes = [2, 8, 8, 8], strides = [1, 1, 1, 1]} : vector<2x10x10x8xf32> to vector<2x8x8x8xf32>
    %22 = vector.extract_strided_slice %13 {offsets = [0, 2, 2, 0], sizes = [2, 8, 8, 8], strides = [1, 1, 1, 1]} : vector<2x10x10x8xf32> to vector<2x8x8x8xf32>
    %23 = tpu.concatenate %14, %15, %16, %17, %18, %19, %20, %21, %22 in 3 : vector<2x8x8x8xf32>, vector<2x8x8x8xf32>, vector<2x8x8x8xf32>, vector<2x8x8x8xf32>, vector<2x8x8x8xf32>, vector<2x8x8x8xf32>, vector<2x8x8x8xf32>, vector<2x8x8x8xf32>, vector<2x8x8x8xf32> -> vector<2x8x8x72xf32>
    %24 = vector.shape_cast %23 : vector<2x8x8x72xf32> to vector<128x72xf32>
    %25 = arith.truncf %24 : vector<128x72xf32> to vector<128x72xbf16>
    %c0_9 = arith.constant 0 : index
    %c0_10 = arith.constant 0 : index
    %26 = vector.load %arg3[%c0_9, %c0_10] : memref<72x8xbf16, #tpu.memory_space<vmem>>, vector<72x8xbf16>
    %cst_11 = arith.constant dense<0.000000e+00> : vector<128x8xf32>
    %27 = tpu.matmul %25, %26, %cst_11 {dimension_numbers = #tpu.dot_dimension_numbers<[1], [0], [0], [1], [0, 0, 1, 1], [], []>} : vector<128x72xbf16>, vector<72x8xbf16>, vector<128x8xf32> -> vector<128x8xf32>
    %c0_12 = arith.constant 0 : index
    %c0_13 = arith.constant 0 : index
    %28 = vector.load %arg6[%c0_12, %c0_13] : memref<1x8xf32, #tpu.memory_space<vmem>>, vector<1x8xf32>
    %29 = vector.broadcast %28 : vector<1x8xf32> to vector<128x8xf32>
    %30 = arith.addf %27, %29 : vector<128x8xf32>
    %cst_14 = arith.constant 0.000000e+00 : f32
    %31 = vector.broadcast %cst_14 : f32 to vector<128x8xf32>
    %32 = arith.maximumf %30, %31 : vector<128x8xf32>
    %33 = arith.truncf %32 : vector<128x8xf32> to vector<128x8xbf16>
    %c0_15 = arith.constant 0 : index
    %c0_16 = arith.constant 0 : index
    %34 = vector.load %arg4[%c0_15, %c0_16] : memref<8x32xbf16, #tpu.memory_space<vmem>>, vector<8x32xbf16>
    %cst_17 = arith.constant dense<0.000000e+00> : vector<128x32xf32>
    %35 = tpu.matmul %33, %34, %cst_17 {dimension_numbers = #tpu.dot_dimension_numbers<[1], [0], [0], [1], [0, 0, 1, 1], [], []>} : vector<128x8xbf16>, vector<8x32xbf16>, vector<128x32xf32> -> vector<128x32xf32>
    %c0_18 = arith.constant 0 : index
    %c0_19 = arith.constant 0 : index
    %36 = vector.load %arg7[%c0_18, %c0_19] : memref<1x32xf32, #tpu.memory_space<vmem>>, vector<1x32xf32>
    %37 = vector.broadcast %36 : vector<1x32xf32> to vector<128x32xf32>
    %38 = arith.addf %35, %37 : vector<128x32xf32>
    %39 = arith.extf %1 : vector<128x32xbf16> to vector<128x32xf32>
    %40 = arith.addf %38, %39 : vector<128x32xf32>
    %cst_20 = arith.constant 0.000000e+00 : f32
    %41 = vector.broadcast %cst_20 : f32 to vector<128x32xf32>
    %42 = arith.maximumf %40, %41 : vector<128x32xf32>
    %43 = vector.shape_cast %42 : vector<128x32xf32> to vector<2x64x32xf32>
    %44 = arith.truncf %43 : vector<2x64x32xf32> to vector<2x64x32xbf16>
    %c0_21 = arith.constant 0 : index
    %c0_22 = arith.constant 0 : index
    %c0_23 = arith.constant 0 : index
    %45 = vector.load %arg8[%c0_21, %c0_22, %c0_23] : memref<2x64x32xbf16, #tpu.memory_space<vmem>>, vector<2x64x32xbf16>
    tpu.vector_store %arg8[%c0_21, %c0_22, %c0_23], %44 {strides = array<i32>} : memref<2x64x32xbf16, #tpu.memory_space<vmem>>, vector<2x64x32xbf16>,
    return
  }
  func.func @transform_0(%arg0: i32) -> (i32, i32, i32) {
    %c0_i32 = arith.constant 0 : i32
    %c0_i32_0 = arith.constant 0 : i32
    %c0_i32_1 = arith.constant 0 : i32
    return %arg0, %c0_i32, %c0_i32_0 : i32, i32, i32
  }
  func.func @transform_1(%arg0: i32) -> (i32, i32) {
    %c0_i32 = arith.constant 0 : i32
    %c0_i32_0 = arith.constant 0 : i32
    %c0_i32_1 = arith.constant 0 : i32
    return %c0_i32, %c0_i32_0 : i32, i32
  }
  func.func @transform_2(%arg0: i32) -> (i32, i32) {
    %c0_i32 = arith.constant 0 : i32
    %c0_i32_0 = arith.constant 0 : i32
    %c0_i32_1 = arith.constant 0 : i32
    return %c0_i32, %c0_i32_0 : i32, i32
  }
  func.func @transform_3(%arg0: i32) -> (i32, i32) {
    %c0_i32 = arith.constant 0 : i32
    %c0_i32_0 = arith.constant 0 : i32
    %c0_i32_1 = arith.constant 0 : i32
    return %c0_i32, %c0_i32_0 : i32, i32
  }
  func.func @transform_4(%arg0: i32) -> (i32, i32) {
    %c0_i32 = arith.constant 0 : i32
    %c0_i32_0 = arith.constant 0 : i32
    %c0_i32_1 = arith.constant 0 : i32
    return %c0_i32, %c0_i32_0 : i32, i32
  }
  func.func @transform_5(%arg0: i32) -> (i32, i32) {
    %c0_i32 = arith.constant 0 : i32
    %c0_i32_0 = arith.constant 0 : i32
    %c0_i32_1 = arith.constant 0 : i32
    return %c0_i32, %c0_i32_0 : i32, i32
  }
  func.func @transform_6(%arg0: i32) -> (i32, i32) {
    %c0_i32 = arith.constant 0 : i32
    %c0_i32_0 = arith.constant 0 : i32
    %c0_i32_1 = arith.constant 0 : i32
    return %c0_i32, %c0_i32_0 : i32, i32
  }
  func.func @transform_7(%arg0: i32) -> (i32, i32, i32) {
    %c0_i32 = arith.constant 0 : i32
    %c0_i32_0 = arith.constant 0 : i32
    %c0_i32_1 = arith.constant 0 : i32
    return %arg0, %c0_i32, %c0_i32_0 : i32, i32, i32
  }
}

</mosaic_0001>

<bundles_post_ra>
// kernel: tpu_custom_call.1
= control target key start
LH: loop header
LB: loop body
LE: loop exit
PB: predicated region body
PF: predicated region fallthrough
CT: control target
= control target key end

     0   :  { %vm106_vm0 = vcmask 261120   ;;  %v1947_v10 = vmov 0.0   ;;  %vm295_vm1 = vcmask 1040384   ;;  %vm451_vm2 = vcmask 1045504   ;;  %s1949_s22 = smov 48   ;;  %s1950_s23 = smov 16   ;;  %s2998_s1 = inlined_call_operand.vmem [shape: bf16[32,8], index: 1, kind: input, shape index: {}]   ;;  %s2999_s0 = inlined_call_operand.vmem [shape: bf16[2,64,32], index: 0, kind: input, shape index: {}]   ;;  %s3000_s4 = inlined_call_operand.vmem [shape: f32[1,8], index: 4, kind: input, shape index: {}]   ;;  %s3001_s2 = inlined_call_operand.vmem [shape: bf16[72,8], index: 2, kind: input, shape index: {}]   ;;  %s3002_s3 = inlined_call_operand.vmem [shape: bf16[8,32], index: 3, kind: input, shape index: {}]   ;;  %s3003_s5 = inlined_call_operand.vmem [shape: f32[1,8], index: 5, kind: input, shape index: {}]   ;;  %s3004_s6 = inlined_call_operand.vmem [shape: f32[1,32], index: 6, kind: input, shape index: {}]   ;;  %s3005_s7 = inlined_call_operand.vmem [shape: bf16[2,64,32], index: 7, kind: output, shape index: {}]  }
   0x1   :  { %v1916_v0 = vld [vmem:[%s2998_s1] sm:$0xff]   ;;  %v1917_v1 = vld [vmem:[%s2998_s1 + $0x8] sm:$0xff]   ;;  %v31_v3 = vld [vmem:[%s2999_s0 + $0x10] sm:$0xff]   ;;  %v261_v11 = vrot.slane %v1947_v10, 7  ;;  %vm360_vm3 = vcmask 1046528   ;;  %s1951_s24 = smov 8  }
   0x2   :  { %1542 = vmatprep.subr.bf16.mxu0 %v1916_v0  ;;  %1606 = vmatprep.subr.bf16.mxu1 %v1916_v0  ;;  %v27_v2 = vld [vmem:[%s2999_s0] sm:$0xff]   ;;  %v29_v4 = vld [vmem:[%s2999_s0 + $0x8] sm:$0xff]   ;;  %v33_v5 = vld [vmem:[%s2999_s0 + $0x18] sm:$0xff]   ;;  %s1952_s25 = smov 32   ;;  %s1953_s26 = smov 64   ;;  %vm1046_vm4 = vcmask 1043456  }
   0x3   :  { %1543 = vmatpush3.bf16.msra.mxu0 %v1916_v0  ;;  %1608 = vmatpush3.bf16.msra.mxu1 %v1916_v0  ;;  %v35_v6 = vld [vmem:[%s2999_s0 + $0x20] sm:$0xff]   ;;  %v37_v7 = vld [vmem:[%s2999_s0 + $0x28] sm:$0xff]   ;;  %v39_v8 = vld [vmem:[%s2999_s0 + $0x30] sm:$0xff]   ;;  %v2040_v13 = vsel %vm295_vm1, 0.0, %v261_v11  ;;  %v313_v16 = vsel %vm295_vm1, %v261_v11, 0.0  ;;  %s1954_s27 = smov 40  }
   0x4   :  { %1544 = vmatprep.subr.bf16.mxu0 %v1917_v1  ;;  %1607 = vmatprep.subr.bf16.mxu1 %v1917_v1  ;;  %v41_v9 = vld [vmem:[%s2999_s0 + $0x38] sm:$0xff]   ;;  %v2037_v12 = vld [vmem:[%s3000_s4] ss:$0 sm:$0xff]  ;;  %v452_v25 = vrot.slane %v2040_v13, 2  ;;  %v453_v31 = vrot.slane %v313_v16, 2  ;;  %v361_v34 = vrot.slane %v2040_v13, 1 }
   0x5   :  { %1546 = vmatprep.mubr.msk.bf16.mxu0 %vm106_vm0, %v27_v2  ;;  %1550 = vmatprep.mubr.msk.bf16.mxu1 %vm106_vm0, %v31_v3  ;;  %v362_v35 = vrot.slane %v313_v16, 1  ;;  %s1948_s4 = smov 24   ;;  %s1955_s30 = smov 56   ;;  %vm837_vm5 = vcmask 64512   ;;  %vm853_vm6 = vcmask 130048   ;;  %vm869_vm7 = vcmask 195584  }
   0x6   :  { %v2063_v47 = vsel %vm451_vm2, %v452_v25, %v453_v31  ;;  %vm902_vm8 = vcmask 326656   ;;  %vm919_vm9 = vcmask 392192   ;;  %vm936_vm10 = vcmask 457728  }
   0x7   :  { %1545 = vmatpush3.bf16.msra.mxu0 %v1917_v1  ;;  %1609 = vmatpush3.bf16.msra.mxu1 %v1917_v1  ;;  %v2066_v48 = vsel %vm360_vm3, %v361_v34, %v362_v35  ;;  %vm953_vm11 = vcmask 523264   ;;  %vm1021_vm12 = vcmask 588800   ;;  %vm1415_vm13 = vcmask 257024  }
   0xa   :  { %1547 = vmatmul.mubr.msk.bf16.vlgmr.msra.gmra.mrb[0].mxu0 %vm106_vm0, %v29_v4  ;;  %1551 = vmatmul.mubr.msk.bf16.vlgmr.msra.gmra.mrb[0].mxu1 %vm106_vm0, %v33_v5 }
   0xb   :  { %1554 = vmatprep.mubr.msk.bf16.mxu1 %vm106_vm0, %v35_v6 }
  0x12   :  { %1555 = vmatmul.mubr.msk.bf16.gmra.mrb[4].mxu1 %vm106_vm0, %v37_v7 }
  0x13   :  { %1558 = vmatprep.mubr.msk.bf16.mxu1 %vm106_vm0, %v39_v8 }
  0x1a   :  { %1559 = vmatmul.mubr.msk.bf16.gmra.mrb[8].mxu1 %vm106_vm0, %v41_v9 }
  0xdd   :  { %v1548_v14 = vpop.f32.mrb[0].mxu0  ;;  %v1552_v15 = vpop.f32.mrb[0].mxu1 }
  0xde   :  { %v174_v17 = vadd.f32 %v1548_v14, %v2037_v12  ;;  %v165_v18 = vpop.f32.mrb[1].mxu0  ;;  %v190_v19 = vadd.f32 %v1552_v15, %v2037_v12  ;;  %v181_v20 = vpop.f32.mrb[1].mxu1 }
  0xdf   :  { %v166_v21 = vadd.f32 %v2037_v12, %v165_v18  ;;  %v1549_v22 = vpop.f32.mrb[2].mxu0  ;;  %v182_v23 = vadd.f32 %v2037_v12, %v181_v20  ;;  %v1553_v24 = vpop.f32.mrb[2].mxu1 }
  0xe0   :  { %v230_v26 = vmax.f32 %v174_v17, 0.0  ;;  %v234_v27 = vmax.f32 %v190_v19, 0.0  ;;  %v177_v28 = vadd.f32 %v1549_v22, %v2037_v12  ;;  %v168_v29 = vpop.f32.mrb[3].mxu0  ;;  %v184_v30 = vpop.f32.mrb[3].mxu1  ;;  %v193_v40 = vadd.f32 %v1553_v24, %v2037_v12 }
  0xe1   :  { %v228_v32 = vmax.f32 %v166_v21, 0.0  ;;  %v169_v33 = vadd.f32 %v2037_v12, %v168_v29  ;;  %v232_v38 = vmax.f32 %v182_v23, 0.0  ;;  %v185_v41 = vadd.f32 %v2037_v12, %v184_v30 }
  0xe2   :  { %v264_v36 = vrot.slane %v230_v26, 7  ;;  %v268_v37 = vrot.slane %v234_v27, 7  ;;  %v231_v44 = vmax.f32 %v177_v28, 0.0  ;;  %v235_v57 = vmax.f32 %v193_v40, 0.0 }
  0xe3   :  { %v262_v39 = vrot.slane %v228_v32, 7  ;;  %v229_v46 = vmax.f32 %v169_v33, 0.0  ;;  %v266_v53 = vrot.slane %v232_v38, 7  ;;  %v233_v58 = vmax.f32 %v185_v41, 0.0 }
  0xe4   :  { %v2054_v42 = vsel %vm295_vm1, 0.0, %v264_v36  ;;  %v2057_v43 = vsel %vm295_vm1, %v264_v36, 0.0  ;;  %v2060_v45 = vsel %vm295_vm1, 0.0, %v268_v37  ;;  %v2077_v52 = vsel %vm295_vm1, %v268_v37, 0.0 }
  0xe5   :  { %3008 = vst [vmem:[#allocation2_spill] sm:$0xff] %v2060_v45  ;;  %v2068_v49 = vpop.f32.mrb[4].mxu1  ;;  %v2071_v50 = vsel %vm295_vm1, 0.0, %v262_v39  ;;  %v2074_v51 = vsel %vm295_vm1, %v262_v39, 0.0  ;;  %v370_v55 = vrot.slane %v2054_v42, 1  ;;  %v371_v56 = vrot.slane %v2057_v43, 1 }
  0xe6   :  { %v2079_v54 = vpop.f32.mrb[5].mxu1  ;;  %v461_v60 = vrot.slane %v2054_v42, 2  ;;  %v462_v61 = vrot.slane %v2057_v43, 2  ;;  %v382_v62 = vrot.slane %v2060_v45, 1  ;;  %v265_v63 = vrot.slane %v231_v44, 7 }
  0xe7   :  { %v2083_v59 = vpop.f32.mrb[6].mxu1  ;;  %v364_v1 = vrot.slane %v2071_v50, 1  ;;  %v365_v2 = vrot.slane %v2074_v51, 1  ;;  %v383_v3 = vrot.slane %v2077_v52, 1  ;;  %v263_v4 = vrot.slane %v229_v46, 7 }
  0xe8   :  { %v2088_v0 = vpop.f32.mrb[7].mxu1  ;;  %v455_v5 = vrot.slane %v2071_v50, 2  ;;  %v456_v6 = vrot.slane %v2074_v51, 2  ;;  %v2096_v7 = vsel %vm295_vm1, 0.0, %v266_v53  ;;  %v318_v8 = vsel %vm295_vm1, %v266_v53, 0.0 }
  0xe9   :  { %v473_v9 = vrot.slane %v2060_v45, 2  ;;  %v474_v10 = vrot.slane %v2077_v52, 2  ;;  %v2102_v11 = vsel %vm295_vm1, 0.0, %v265_v63  ;;  %v317_v14 = vsel %vm295_vm1, %v265_v63, 0.0 }
  0xea   :  { %v2106_v15 = vsel %vm295_vm1, 0.0, %v263_v4  ;;  %v2109_v16 = vsel %vm295_vm1, %v263_v4, 0.0  ;;  %v269_v17 = vrot.slane %v235_v57, 7  ;;  %v267_v18 = vrot.slane %v233_v58, 7 }
  0xeb   :  { %v376_v19 = vrot.slane %v2096_v7, 1  ;;  %v377_v20 = vrot.slane %v318_v8, 1  ;;  %v467_v21 = vrot.slane %v2096_v7, 2  ;;  %v468_v22 = vrot.slane %v318_v8, 2 }
  0xec   :  { %v373_v24 = vrot.slane %v2102_v11, 1  ;;  %v374_v25 = vrot.slane %v317_v14, 1  ;;  %v2117_v26 = vsel %vm295_vm1, 0.0, %v269_v17  ;;  %v321_v27 = vsel %vm295_vm1, %v269_v17, 0.0 }
  0xed   :  { %v2113_v23 = vpop.f32.mrb[8].mxu1  ;;  %v464_v29 = vrot.slane %v2102_v11, 2  ;;  %v465_v30 = vrot.slane %v317_v14, 2  ;;  %v367_v31 = vrot.slane %v2106_v15, 1  ;;  %v368_v32 = vrot.slane %v2109_v16, 1 }
  0xee   :  { %v2120_v28 = vpop.f32.mrb[9].mxu1  ;;  %v458_v34 = vrot.slane %v2106_v15, 2  ;;  %v459_v35 = vrot.slane %v2109_v16, 2  ;;  %v2130_v36 = vsel %vm295_vm1, 0.0, %v267_v18  ;;  %v2133_v37 = vsel %vm295_vm1, %v267_v18, 0.0 }
  0xef   :  { %v2125_v33 = vpop.f32.mrb[10].mxu1  ;;  %3009 = vst [vmem:[#allocation3_spill] sm:$0xff] %v2130_v36  ;;  %v594_v39 = vrot.slane %v2117_v26, 1  ;;  %v595_v40 = vrot.slane %v321_v27, 1  ;;  %v1621_v41 = vpack.i.bf16 %v2102_v11, %v2054_v42  ;;  %v1641_v43 = vpack.i.bf16 %v2106_v15, %v2071_v50 }
  0xf0   :  { %v2135_v38 = vpop.f32.mrb[11].mxu1  ;;  %v648_v44 = vrot.slane %v2117_v26, 2  ;;  %v649_v46 = vrot.slane %v321_v27, 2  ;;  %v1626_v53 = vpack.i.bf16 %v2096_v7, %v2102_v11  ;;  %v1646_v57 = vpack.i.bf16 %v2054_v42, %v2106_v15 }
  0xf1   :  { %v379_v58 = vrot.slane %v2130_v36, 1  ;;  %1622 = vrot.lane.b32.xlu1 %v1621_v41, %s1948_s4  ;;  %1642 = vrot.lane.b32.xlu0 %v1641_v43, %s1948_s4  ;;  %v1631_v63 = vpack.i.bf16 %v2117_v26, %v2060_v45  ;;  %v1651_v4 = vpack.i.bf16 %v2130_v36, %v2096_v7  ;;  %v1636_v8 = vpack.i.bf16 %v2040_v13, %v2117_v26 }
  0xf2   :  { %v2157_v14 = vsel %vm451_vm2, %v455_v5, %v456_v6  ;;  %v2162_v16 = vsel %vm360_vm3, %v370_v55, %v371_v56  ;;  %v2165_v17 = vsel %vm360_vm3, %v373_v24, %v374_v25  ;;  %v2168_v18 = vsel %vm451_vm2, %v464_v29, %v465_v30 }
  0xf3   :  { %v1671_v27 = vpack.i.bf16 %v2165_v17, %v2162_v16  ;;  %v2173_v41 = vsel %vm451_vm2, %v467_v21, %v468_v22  ;;  %v2178_v5 = vsel %vm451_vm2, %v461_v60, %v462_v61  ;;  %v2181_v55 = vsel %vm360_vm3, %v376_v19, %v377_v20 }
  0xf4   :  { %v2185_v56 = vpack.i.bf16 %v2173_v41, %v2168_v18  ;;  %v2191_v24 = vpack.i.bf16 %v2181_v55, %v2165_v17  ;;  %v380_v21 = vrot.slane %v2133_v37, 1  ;;  %v2197_v60 = vsel %vm451_vm2, %v648_v44, %v649_v46 }
  0xf5   :  { %1627 = vrot.lane.b32.xlu1 %v1626_v53, %s1949_s22  ;;  %1647 = vrot.lane.b32.xlu0 %v1646_v57, %s1949_s22  ;;  %v2200_v61 = vsel %vm360_vm3, %v367_v31, %v368_v32  ;;  %v2207_v19 = vsel %vm360_vm3, %v364_v1, %v365_v2  ;;  %v2218_v22 = vsel %vm360_vm3, %v382_v62, %v383_v3  ;;  %v470_v30 = vrot.slane %v2130_v36, 2 }
  0xf6   :  { %v2211_v20 = vpack.i.bf16 %v2162_v16, %v2200_v61  ;;  %v2221_v25 = vsel %vm360_vm3, %v594_v39, %v595_v40  ;;  %v2232_v2 = vsel %vm451_vm2, %v473_v9, %v474_v10  ;;  %v2235_v26 = vsel %vm451_vm2, %v458_v34, %v459_v35 }
  0xf7   :  { %v1656_v62 = vpack.i.bf16 %v2060_v45, %v2130_v36  ;;  %v206_v52 = vadd.f32 %v2068_v49, %v2037_v12  ;;  %v198_v9 = vadd.f32 %v2037_v12, %v2079_v54  ;;  %v209_v10 = vadd.f32 %v2083_v59, %v2037_v12 }
  0xf8   :  { %v201_v32 = vadd.f32 %v2037_v12, %v2088_v0  ;;  %v2256_v34 = vpack.i.bf16 %v2178_v5, %v2235_v26  ;;  %v222_v49 = vadd.f32 %v2113_v23, %v2037_v12  ;;  %v214_v40 = vadd.f32 %v2037_v12, %v2120_v28 }
  0xf9   :  { %1632 = vrot.lane.b32.xlu1 %v1631_v63, %s1948_s4  ;;  %1652 = vrot.lane.b32.xlu0 %v1651_v4, %s1948_s4  ;;  %v238_v31 = vmax.f32 %v206_v52, 0.0  ;;  %v236_v35 = vmax.f32 %v198_v9, 0.0  ;;  %v239_v39 = vmax.f32 %v209_v10, 0.0  ;;  %v2263_v59 = vsel %vm360_vm3, %v379_v58, %v380_v21 }
  0xfa   :  { %v237_v43 = vmax.f32 %v201_v32, 0.0  ;;  %v242_v44 = vmax.f32 %v222_v49, 0.0  ;;  %v471_v0 = vrot.slane %v2133_v37, 2  ;;  %v2270_v23 = vpack.i.bf16 %v2218_v22, %v2263_v59 }
  0xfb   :  { %v272_v54 = vrot.slane %v238_v31, 7  ;;  %v270_v46 = vrot.slane %v236_v35, 7  ;;  %v273_v53 = vrot.slane %v239_v39, 7  ;;  %v1666_v28 = vpack.i.bf16 %v2157_v14, %v2063_v47 }
  0xfc   :  { %v1661_v57 = vpack.i.bf16 %v2207_v19, %v2066_v48  ;;  %v271_v4 = vrot.slane %v237_v43, 7  ;;  %v240_v21 = vmax.f32 %v214_v40, 0.0  ;;  %v2321_v51 = vsel %vm451_vm2, %v470_v30, %v471_v0 }
  0xfd   :  { %1637 = vrot.lane.b32.xlu1 %v1636_v8, %s1949_s22  ;;  %1657 = vrot.lane.b32.xlu0 %v1656_v62, %s1949_s22  ;;  %v2277_v58 = vsel %vm295_vm1, 0.0, %v272_v54  ;;  %v324_v37 = vsel %vm295_vm1, %v272_v54, 0.0  ;;  %v276_v8 = vrot.slane %v242_v44, 7  ;;  %v2283_v62 = vsel %vm295_vm1, 0.0, %v270_v46 }
  0xfe   :  { %v322_v52 = vsel %vm295_vm1, %v270_v46, 0.0  ;;  %v2287_v9 = vsel %vm295_vm1, 0.0, %v273_v53  ;;  %v325_v10 = vsel %vm295_vm1, %v273_v53, 0.0  ;;  %v391_v31 = vrot.slane %v2277_v58, 1 }
  0xff   :  { %v392_v32 = vrot.slane %v324_v37, 1  ;;  %v482_v49 = vrot.slane %v2277_v58, 2  ;;  %v483_v35 = vrot.slane %v324_v37, 2  ;;  %v385_v39 = vrot.slane %v2283_v62, 1 }
 0x100   :  { %v386_v40 = vrot.slane %v322_v52, 1  ;;  %v476_v54 = vrot.slane %v2283_v62, 2  ;;  %v477_v43 = vrot.slane %v322_v52, 2  ;;  %v394_v44 = vrot.slane %v2287_v9, 1 }
 0x101   :  { %1667 = vrot.lane.b32.xlu1 %v1666_v28, %s1950_s23  ;;  %1662 = vrot.lane.b32.xlu0 %v1661_v57, %s1951_s24  ;;  %v395_v46 = vrot.slane %v325_v10, 1  ;;  %v2298_v53 = vsel %vm295_vm1, 0.0, %v271_v4  ;;  %v323_v28 = vsel %vm295_vm1, %v271_v4, 0.0  ;;  %v485_v57 = vrot.slane %v2287_v9, 2 }
 0x102   :  { %v486_v29 = vrot.slane %v325_v10, 2  ;;  %v2303_v3 = vsel %vm295_vm1, 0.0, %v276_v8  ;;  %v2306_v37 = vsel %vm295_vm1, %v276_v8, 0.0  ;;  %v388_v4 = vrot.slane %v2298_v53, 1 }
 0x103   :  { %v389_v52 = vrot.slane %v323_v28, 1  ;;  %v274_v10 = vrot.slane %v240_v21, 7  ;;  %v479_v8 = vrot.slane %v2298_v53, 2  ;;  %v2324_v16 = vsel %vm360_vm3, %v391_v31, %v392_v32 }
 0x104   :  { %v2332_v21 = vpack.i.bf16 %v2232_v2, %v2321_v51  ;;  %v480_v63 = vrot.slane %v323_v28, 2  ;;  %v404_v6 = vrot.slane %v2306_v37, 1  ;;  %v3010_v31 = vpack.i.bf16 %v2168_v18, %v2178_v5 }
 0x105   :  { %1672 = vrot.lane.b32.xlu1 %v1671_v27, %s1952_s25  ;;  %1692 = vrot.lane.b32.xlu0 %v2185_v56, %s1953_s26  ;;  %v2327_v17 = vsel %vm295_vm1, 0.0, %v274_v10  ;;  %v326_v27 = vsel %vm295_vm1, %v274_v10, 0.0  ;;  %v2346_v10 = vsel %vm360_vm3, %v394_v44, %v395_v46  ;;  %v2349_v28 = vsel %vm451_vm2, %v482_v49, %v483_v35  ;;  %v1926_v35 = vld [vmem:[%s3001_s2] sm:$0xff]  }
 0x106   :  { %v397_v30 = vrot.slane %v2327_v17, 1  ;;  %v398_v0 = vrot.slane %v326_v27, 1  ;;  %v488_v32 = vrot.slane %v2327_v17, 2  ;;  %v489_v1 = vrot.slane %v326_v27, 2  ;;  %1562 = vmatprep.subr.bf16.mxu1 %v1926_v35 }
 0x107   :  { %v2353_v36 = vpack.i.bf16 %v2346_v10, %v2324_v16  ;;  %v2356_v45 = vsel %vm451_vm2, %v485_v57, %v486_v29  ;;  %v225_v5 = vadd.f32 %v2125_v33, %v2037_v12  ;;  %v403_v49 = vrot.slane %v2303_v3, 1  ;;  %1563 = vmatpush3.bf16.msra.mxu1 %v1926_v35 }
 0x108   :  { %v2360_v18 = vpack.i.bf16 %v2356_v45, %v2349_v28  ;;  %v478_v44 = vsel %vm451_vm2, %v476_v54, %v477_v43  ;;  %v2372_v29 = vsel %vm451_vm2, %v479_v8, %v480_v63  ;;  %v387_v46 = vsel %vm360_vm3, %v385_v39, %v386_v40  ;;  %v1927_v40 = vld [vmem:[%s3001_s2 + $0x8] sm:$0xff]  }
 0x109   :  { %1677 = vrot.lane.b32.xlu1 %v3010_v31, %s1954_s27  ;;  %1697 = vrot.lane.b32.xlu0 %v2185_v56, %s1950_s23  ;;  %v217_v56 = vadd.f32 %v2037_v12, %v2135_v38  ;;  %v3011_v12 = vpack.i.bf16 %v2063_v47, %v2197_v60  ;;  %v243_v33 = vmax.f32 %v225_v5, 0.0  ;;  %v2382_v57 = vpack.i.bf16 %v2372_v29, %v478_v44 }
 0x10a   :  { %v2385_v54 = vsel %vm360_vm3, %v388_v4, %v389_v52  ;;  %v495_v63 = vrot.slane %v2306_v37, 2  ;;  %v1841_v27 = vpack.i.bf16 %v2349_v28, %v2372_v29  ;;  %v2399_v4 = vsel %vm360_vm3, %v403_v49, %v404_v6  ;;  %1564 = vmatprep.subr.bf16.mxu1 %v1927_v40 }
 0x10b   :  { %v241_v38 = vmax.f32 %v217_v56, 0.0  ;;  %v2389_v39 = vpack.i.bf16 %v2385_v54, %v387_v46  ;;  %v277_v47 = vrot.slane %v243_v33, 7  ;;  %v1836_v8 = vpack.i.bf16 %v2324_v16, %v2385_v54  ;;  %1565 = vmatpush3.bf16.msra.mxu1 %v1927_v40 }
 0x10c   :  { %v494_v37 = vrot.slane %v2303_v3, 2  ;;  %v2403_v52 = vsel %vm360_vm3, %v397_v30, %v398_v0  ;;  %v2406_v31 = vsel %vm451_vm2, %v488_v32, %v489_v1 }
 0x10d   :  { %1682 = vrot.lane.b32.xlu1 %v2191_v24, %s1955_s30  ;;  %1717 = vrot.lane.b32.xlu0 %v3011_v12, %s1953_s26  ;;  %v275_v43 = vrot.slane %v241_v38, 7  ;;  %v2413_v5 = vsel %vm295_vm1, 0.0, %v277_v47  ;;  %v329_v6 = vsel %vm295_vm1, %v277_v47, 0.0  ;;  %v3012_v38 = vpack.i.bf16 %v2221_v25, %v2218_v22 }
 0x10e   :  { %v597_v1 = vrot.slane %v2413_v5, 1  ;;  %v598_v0 = vrot.slane %v329_v6, 1  ;;  %v651_v32 = vrot.slane %v2413_v5, 2  ;;  %v652_v49 = vrot.slane %v329_v6, 2 }
 0x10f   :  { %v2417_v56 = vsel %vm295_vm1, 0.0, %v275_v43  ;;  %v327_v30 = vsel %vm295_vm1, %v275_v43, 0.0  ;;  %v2428_v33 = vsel %vm451_vm2, %v494_v37, %v495_v63  ;;  %v3013_v47 = vpack.i.bf16 %v2200_v61, %v2207_v19 }
 0x110   :  { %v400_v35 = vrot.slane %v2417_v56, 1  ;;  %v401_v44 = vrot.slane %v327_v30, 1  ;;  %v491_v46 = vrot.slane %v2417_v56, 2  ;;  %v492_v12 = vrot.slane %v327_v30, 2 }
 0x111   :  { %1687 = vrot.lane.b32.xlu1 %v2191_v24, %s1951_s24  ;;  %1722 = vrot.lane.b32.xlu0 %v2211_v20, %s1951_s24  ;;  %v1928_v24 = vld [vmem:[%s3001_s2 + $0x10] sm:$0xff]   ;;  %v1866_v43 = vpack.i.bf16 %v2403_v52, %v2346_v10  ;;  %v1871_v40 = vpack.i.bf16 %v2406_v31, %v2356_v45  ;;  %v2443_v63 = vsel %vm360_vm3, %v597_v1, %v598_v0 }
 0x112   :  { %1566 = vmatprep.subr.bf16.mxu1 %v1928_v24  ;;  %v1876_v37 = vpack.i.bf16 %v2443_v63, %v2399_v4  ;;  %v2448_v22 = vsel %vm451_vm2, %v491_v46, %v492_v12  ;;  %v2451_v6 = vsel %vm451_vm2, %v651_v32, %v652_v49  ;;  %v2454_v61 = vsel %vm360_vm3, %v400_v35, %v401_v44  ;;  %v1929_v32 = vld [vmem:[%s3001_s2 + $0x18] sm:$0xff]   ;;  %v1930_v49 = vld [vmem:[%s3001_s2 + $0x20] ss:$0 sps:$4 sm:$0xff]  }
 0x113   :  { %v1891_v19 = vpack.i.bf16 %v2448_v22, %v2406_v31  ;;  %v1881_v45 = vpack.i.bf16 %v2451_v6, %v2428_v33  ;;  %v1896_v10 = vpack.i.bf16 %v2454_v61, %v2403_v52  ;;  %1567 = vmatpush3.bf16.msra.mxu1 %v1928_v24  ;;  %v1906_v30 = vpack.i.bf16 %v2399_v4, %v2454_v61 }
 0x114   :  { %v1911_v1 = vpack.i.bf16 %v2428_v33, %v2448_v22  ;;  %v3014_v0 = vpack.i.bf16 %v2197_v60, %v2232_v2  ;;  %v3015_v31 = vpack.i.bf16 %v2235_v26, %v2157_v14  ;;  %v1711_v52 = vpack.i.bf16 %v2066_v48, %v2221_v25  ;;  %1568 = vmatprep.subr.bf16.mxu1 %v1929_v32 }
 0x115   :  { %1702 = vrot.lane.b32.xlu1 %v3012_v38, %s1952_s25  ;;  %1732 = vrot.lane.b32.xlu0 %v3013_v47, %s1952_s25  ;;  %v1048_v48 = vsel %vm1046_vm4, %v1930_v49, 0  ;;  %v3016_v14 = vpack.i.bf16 %v2263_v59, %v2181_v55  ;;  %v3017_v60 = vpack.i.bf16 %v2321_v51, %v2173_v41  ;;  %v1786_v55 = vpack.i.bf16 %v2298_v53, %v2283_v62 }
 0x116   :  { %v1791_v41 = vpack.i.bf16 %v2277_v58, %v2298_v53  ;;  %v1846_v25 = vpack.i.bf16 %v2327_v17, %v2287_v9  ;;  %v1856_v51 = vpack.i.bf16 %v2417_v56, %v2327_v17  ;;  %v1861_v2 = vpack.i.bf16 %v2303_v3, %v2417_v56 }
 0x117   :  { %1569 = vmatpush3.bf16.msra.mxu1 %v1929_v32 }
 0x118   :  { %1610 = vmatprep.subr.msk.bf16.mxu1 %vm1046_vm4, %v1930_v49 }
 0x119   :  { %1707 = vrot.lane.b32.xlu1 %v3014_v0, %s1954_s27  ;;  %1737 = vrot.lane.b32.xlu0 %v3015_v31, %s1954_s27 }
 0x11b   :  { %1571 = vmatpush3.bf16.msra.mxu1 %v1048_v48 }
 0x11d   :  { %1712 = vrot.lane.b32.xlu1 %v1711_v52, %s1955_s30  ;;  %1742 = vrot.lane.b32.xlu0 %v2211_v20, %s1955_s30  ;;  %v1781_v20 = vpack.i.bf16 %v2287_v9, %v2277_v58 }
 0x121   :  { %1727 = vrot.lane.b32.xlu1 %v2256_v34, %s1950_s23  ;;  %1747 = vrot.lane.b32.xlu0 %v2256_v34, %s1953_s26 }
 0x125   :  { %1752 = vrot.lane.b32.xlu1 %v2270_v23, %s1951_s24  ;;  %1762 = vrot.lane.b32.xlu0 %v3016_v14, %s1952_s25 }
 0x129   :  { %1757 = vrot.lane.b32.xlu1 %v2332_v21, %s1950_s23  ;;  %1767 = vrot.lane.b32.xlu0 %v3017_v60, %s1954_s27 }
 0x12d   :  { %1782 = vrot.lane.b32.xlu1 %v1781_v20, %s1948_s4  ;;  %1772 = vrot.lane.b32.xlu0 %v2270_v23, %s1955_s30 }
 0x131   :  { %1797 = vrot.lane.b32.xlu1 %v2353_v36, %s1951_s24  ;;  %1777 = vrot.lane.b32.xlu0 %v2332_v21, %s1953_s26 }
 0x135   :  { %1802 = vrot.lane.b32.xlu1 %v2360_v18, %s1950_s23  ;;  %1787 = vrot.lane.b32.xlu0 %v1786_v55, %s1948_s4 }
 0x139   :  { %1807 = vrot.lane.b32.xlu1 %v2353_v36, %s1952_s25  ;;  %1792 = vrot.lane.b32.xlu0 %v1791_v41, %s1949_s22  ;;  %v1851_v36 = vpack.i.bf16 %v2413_v5, %v2303_v3 }
 0x13d   :  { %1812 = vrot.lane.b32.xlu1 %v2360_v18, %s1954_s27  ;;  %1822 = vrot.lane.b32.xlu0 %v2382_v57, %s1950_s23 }
 0x141   :  { %1817 = vrot.lane.b32.xlu1 %v2389_v39, %s1951_s24  ;;  %1827 = vrot.lane.b32.xlu0 %v2389_v39, %s1952_s25 }
 0x145   :  { %1847 = vrot.lane.b32.xlu1 %v1846_v25, %s1949_s22  ;;  %1832 = vrot.lane.b32.xlu0 %v2382_v57, %s1954_s27 }
 0x149   :  { %1852 = vrot.lane.b32.xlu1 %v1851_v36, %s1948_s4  ;;  %1837 = vrot.lane.b32.xlu0 %v1836_v8, %s1955_s30 }
 0x14d   :  { %730 = vrot.lane.b32.xlu1 %v2413_v5, %s1949_s22  ;;  %1842 = vrot.lane.b32.xlu0 %v1841_v27, %s1953_s26 }
 0x151   :  { %434 = vrot.lane.b32.xlu1 %v2399_v4, %s1951_s24  ;;  %1857 = vrot.lane.b32.xlu0 %v1856_v51, %s1948_s4 }
 0x155   :  { %525 = vrot.lane.b32.xlu1 %v2428_v33, %s1950_s23  ;;  %1862 = vrot.lane.b32.xlu0 %v1861_v2, %s1949_s22 }
 0x159   :  { %1867 = vrot.lane.b32.xlu1 %v1866_v43, %s1955_s30  ;;  %1872 = vrot.lane.b32.xlu0 %v1871_v40, %s1953_s26 }
 0x15d   :  { %1877 = vrot.lane.b32.xlu1 %v1876_v37, %s1952_s25  ;;  %1892 = vrot.lane.b32.xlu0 %v1891_v19, %s1950_s23 }
 0x161   :  { %1882 = vrot.lane.b32.xlu1 %v1881_v45, %s1954_s27  ;;  %1897 = vrot.lane.b32.xlu0 %v1896_v10, %s1952_s25 }
 0x163   :  { %v2564_v26 = vpop.permute.xlu1 %1622  ;;  %v2566_v34 = vpop.permute.xlu0 %1642 }
 0x164   :  { %v1625_v12 = vunpack.i.h.bf16 %v2564_v26  ;;  %v1624_v33 = vunpack.i.l.bf16 %v2564_v26  ;;  %v1645_v38 = vunpack.i.h.bf16 %v2566_v34  ;;  %v1644_v47 = vunpack.i.l.bf16 %v2566_v34 }
 0x165   :  { %1887 = vrot.lane.b32.xlu1 %v1896_v10, %s1951_s24  ;;  %1902 = vrot.lane.b32.xlu0 %v1891_v19, %s1954_s27 }
 0x167   :  { %v2570_v59 = vpop.permute.xlu1 %1627  ;;  %v2572_v23 = vpop.permute.xlu0 %1647 }
 0x168   :  { %v1630_v43 = vunpack.i.h.bf16 %v2570_v59  ;;  %v1629_v40 = vunpack.i.l.bf16 %v2570_v59  ;;  %v1650_v22 = vunpack.i.h.bf16 %v2572_v23  ;;  %v3019_v59 = vld [vmem:[#allocation3_spill] sm:$0xff] }
 0x169   :  { %775 = vrot.lane.b32.xlu1 %v2443_v63, %s1955_s30  ;;  %1907 = vrot.lane.b32.xlu0 %v1906_v30, %s1955_s30 }
 0x16b   :  { %v2577_v16 = vpop.permute.xlu1 %1632  ;;  %v2579_v21 = vpop.permute.xlu0 %1652 }
 0x16c   :  { %v1635_v45 = vunpack.i.h.bf16 %v2577_v16  ;;  %v1634_v10 = vunpack.i.l.bf16 %v2577_v16  ;;  %v1655_v0 = vunpack.i.h.bf16 %v2579_v21  ;;  %v1654_v31 = vunpack.i.l.bf16 %v2579_v21 }
 0x16d   :  { %820 = vrot.lane.b32.xlu1 %v2451_v6, %s1953_s26  ;;  %1912 = vrot.lane.b32.xlu0 %v1911_v1, %s1953_s26  ;;  %v1649_v6 = vunpack.i.l.bf16 %v2572_v23 }
 0x16f   :  { %v2587_v28 = vpop.permute.xlu1 %1637  ;;  %v2589_v18 = vpop.permute.xlu0 %1657 }
 0x170   :  { %v1640_v52 = vunpack.i.h.bf16 %v2587_v28  ;;  %v1639_v32 = vunpack.i.l.bf16 %v2587_v28 }
 0x173   :  { %v1668_v29 = vpop.permute.xlu1 %1667  ;;  %v1663_v57 = vpop.permute.xlu0 %1662 }
 0x174   :  { %v1665_v44 = vunpack.i.h.bf16 %v1663_v57  ;;  %v1664_v46 = vunpack.i.l.bf16 %v1663_v57  ;;  %v1670_v30 = vunpack.i.h.bf16 %v1668_v29  ;;  %v1669_v1 = vunpack.i.l.bf16 %v1668_v29 }
 0x176   :  { %v839_v61 = vsel %vm837_vm5, %v2071_v50, %v1665_v44  ;;  %v838_v19 = vsel %vm837_vm5, %v2040_v13, %v1664_v46 }
 0x177   :  { %v2591_v54 = vpop.permute.xlu1 %1672  ;;  %v2593_v39 = vpop.permute.xlu0 %1692  ;;  %v855_v50 = vsel %vm853_vm6, %v839_v61, %v1670_v30  ;;  %v2627_v13 = vsel %vm853_vm6, %v838_v19, %v1669_v1 }
 0x178   :  { %v1675_v36 = vunpack.i.h.bf16 %v2591_v54  ;;  %v1674_v51 = vunpack.i.l.bf16 %v2591_v54  ;;  %v1695_v2 = vunpack.i.h.bf16 %v2593_v39  ;;  %v1694_v34 = vunpack.i.l.bf16 %v2593_v39 }
 0x179   :  { %v870_v57 = vsel %vm869_vm7, %v2627_v13, %v1644_v47  ;;  %v871_v44 = vsel %vm869_vm7, %v855_v50, %v1645_v38 }
 0x17b   :  { %v2595_v8 = vpop.permute.xlu1 %1677  ;;  %v2597_v27 = vpop.permute.xlu0 %1697 }
 0x17c   :  { %v1679_v46 = vunpack.i.l.bf16 %v2595_v8  ;;  %v1700_v1 = vunpack.i.h.bf16 %v2597_v27 }
 0x17f   :  { %v2599_v4 = vpop.permute.xlu1 %1682  ;;  %v2601_v5 = vpop.permute.xlu0 %1717 }
 0x183   :  { %v1688_v24 = vpop.permute.xlu1 %1687  ;;  %v2603_v35 = vpop.permute.xlu0 %1722 }
 0x184   :  { %v1690_v20 = vunpack.i.h.bf16 %v1688_v24  ;;  %v1689_v55 = vunpack.i.l.bf16 %v1688_v24  ;;  %v1725_v23 = vunpack.i.h.bf16 %v2603_v35  ;;  %v1724_v29 = vunpack.i.l.bf16 %v2603_v35 }
 0x185   :  { %v1680_v24 = vunpack.i.h.bf16 %v2595_v8  ;;  %v1699_v8 = vunpack.i.l.bf16 %v2597_v27 }
 0x186   :  { %v843_v35 = vsel %vm837_vm5, %v2096_v7, %v1690_v20  ;;  %v842_v47 = vsel %vm837_vm5, %v2102_v11, %v1689_v55  ;;  %v841_v7 = vsel %vm837_vm5, %v2054_v42, %v1725_v23  ;;  %v840_v11 = vsel %vm837_vm5, %v2106_v15, %v1724_v29 }
 0x187   :  { %v2611_v63 = vpop.permute.xlu1 %1702  ;;  %v1733_v37 = vpop.permute.xlu0 %1732  ;;  %v858_v20 = vsel %vm853_vm6, %v842_v47, %v1699_v8  ;;  %v859_v55 = vsel %vm853_vm6, %v843_v35, %v1700_v1 }
 0x188   :  { %v1735_v49 = vunpack.i.h.bf16 %v1733_v37  ;;  %v1734_v48 = vunpack.i.l.bf16 %v1733_v37  ;;  %v1704_v42 = vunpack.i.l.bf16 %v2611_v63  ;;  %v874_v8 = vsel %vm869_vm7, %v858_v20, %v1654_v31 }
 0x18a   :  { %v886_v54 = vsel %vm106_vm0, %v870_v57, %v1734_v48  ;;  %v887_v37 = vsel %vm106_vm0, %v871_v44, %v1735_v49  ;;  %v1685_v49 = vunpack.i.h.bf16 %v2599_v4 }
 0x18b   :  { %v2629_v14 = vpop.permute.xlu1 %1707  ;;  %v1738_v60 = vpop.permute.xlu0 %1737 }
 0x18c   :  { %v1740_v41 = vunpack.i.h.bf16 %v1738_v60  ;;  %v1739_v25 = vunpack.i.l.bf16 %v1738_v60  ;;  %v1684_v60 = vunpack.i.l.bf16 %v2599_v4  ;;  %v1709_v31 = vunpack.i.l.bf16 %v2629_v14 }
 0x18e   :  { %v903_v38 = vsel %vm902_vm8, %v886_v54, %v1739_v25  ;;  %v904_v30 = vsel %vm902_vm8, %v887_v37, %v1740_v41 }
 0x18f   :  { %v2644_v61 = vpop.permute.xlu1 %1712  ;;  %v1743_v19 = vpop.permute.xlu0 %1742  ;;  %v920_v41 = vsel %vm919_vm9, %v903_v38, %v1649_v6  ;;  %v921_v27 = vsel %vm919_vm9, %v904_v30, %v1650_v22 }
 0x190   :  { %v1745_v50 = vunpack.i.h.bf16 %v1743_v19  ;;  %v1744_v48 = vunpack.i.l.bf16 %v1743_v19  ;;  %v1705_v19 = vunpack.i.h.bf16 %v2611_v63 }
 0x192   :  { %v937_v15 = vsel %vm936_vm10, %v920_v41, %v1744_v48  ;;  %v938_v23 = vsel %vm936_vm10, %v921_v27, %v1745_v50  ;;  %v1710_v50 = vunpack.i.h.bf16 %v2629_v14 }
 0x193   :  { %v1728_v25 = vpop.permute.xlu1 %1727  ;;  %v1748_v57 = vpop.permute.xlu0 %1747 }
 0x194   :  { %v1730_v44 = vunpack.i.h.bf16 %v1728_v25  ;;  %v1729_v54 = vunpack.i.l.bf16 %v1728_v25  ;;  %v1750_v37 = vunpack.i.h.bf16 %v1748_v57  ;;  %v1749_v4 = vunpack.i.l.bf16 %v1748_v57 }
 0x196   :  { %v856_v29 = vsel %vm853_vm6, %v840_v11, %v1729_v54  ;;  %v857_v6 = vsel %vm853_vm6, %v841_v7, %v1730_v44  ;;  %v954_v22 = vsel %vm953_vm11, %v937_v15, %v1749_v4  ;;  %v955_v35 = vsel %vm953_vm11, %v938_v23, %v1750_v37  ;;  %v3018_v54 = vld [vmem:[#allocation2_spill] sm:$0xff] }
 0x197   :  { %v872_v47 = vsel %vm869_vm7, %v856_v29, %v1624_v33  ;;  %v873_v63 = vsel %vm869_vm7, %v857_v6, %v1625_v12  ;;  %v970_v38 = vpack.c.bf16 %v955_v35, %v954_v22  ;;  %v1753_v30 = vpop.permute.xlu1 %1752  ;;  %v1763_v1 = vpop.permute.xlu0 %1762  ;;  %v875_v33 = vsel %vm869_vm7, %v859_v55, %v1655_v0 }
 0x198   :  { %v888_v48 = vsel %vm106_vm0, %v872_v47, %v1674_v51  ;;  %v889_v7 = vsel %vm106_vm0, %v873_v63, %v1675_v36  ;;  %v1755_v11 = vunpack.i.h.bf16 %v1753_v30  ;;  %v1754_v41 = vunpack.i.l.bf16 %v1753_v30 }
 0x199   :  { %v905_v26 = vsel %vm902_vm8, %v888_v48, %v1679_v46  ;;  %v906_v12 = vsel %vm902_vm8, %v889_v7, %v1680_v24  ;;  %1572 = vmatprep.mubr.msk.bf16.mxu1 %vm1021_vm12, %v970_v38  ;;  %v1764_v36 = vunpack.i.l.bf16 %v1763_v1  ;;  %v1715_v0 = vunpack.i.h.bf16 %v2644_v61 }
 0x19a   :  { %v922_v51 = vsel %vm919_vm9, %v905_v26, %v1629_v40  ;;  %v923_v21 = vsel %vm919_vm9, %v906_v12, %v1630_v43  ;;  %v1765_v20 = vunpack.i.h.bf16 %v1763_v1  ;;  %v845_v40 = vsel %vm837_vm5, %v3018_v54, %v1755_v11 }
 0x19b   :  { %v939_v46 = vsel %vm936_vm10, %v922_v51, %v1684_v60  ;;  %v940_v24 = vsel %vm936_vm10, %v923_v21, %v1685_v49  ;;  %v1758_v55 = vpop.permute.xlu1 %1757  ;;  %v1768_v27 = vpop.permute.xlu0 %1767  ;;  %v844_v43 = vsel %vm837_vm5, %v3019_v59, %v1754_v41  ;;  %v1714_v60 = vunpack.i.l.bf16 %v2644_v61 }
 0x19c   :  { %v1760_v25 = vunpack.i.h.bf16 %v1758_v55  ;;  %v1759_v14 = vunpack.i.l.bf16 %v1758_v55  ;;  %v1770_v57 = vunpack.i.h.bf16 %v1768_v27  ;;  %v1769_v44 = vunpack.i.l.bf16 %v1768_v27 }
 0x19d   :  { %v956_v37 = vsel %vm953_vm11, %v939_v46, %v1694_v34  ;;  %v957_v49 = vsel %vm953_vm11, %v940_v24, %v1695_v2  ;;  %v890_v4 = vsel %vm106_vm0, %v874_v8, %v1764_v36  ;;  %v891_v29 = vsel %vm106_vm0, %v875_v33, %v1765_v20 }
 0x19e   :  { %v860_v15 = vsel %vm853_vm6, %v844_v43, %v1759_v14  ;;  %v861_v23 = vsel %vm853_vm6, %v845_v40, %v1760_v25  ;;  %v971_v2 = vpack.c.bf16 %v957_v49, %v956_v37  ;;  %v907_v63 = vsel %vm902_vm8, %v890_v4, %v1769_v44 }
 0x19f   :  { %v876_v6 = vsel %vm869_vm7, %v860_v15, %v1634_v10  ;;  %v877_v39 = vsel %vm869_vm7, %v861_v23, %v1635_v45  ;;  %v2721_v34 = vpop.permute.xlu1 %1782  ;;  %v1773_v22 = vpop.permute.xlu0 %1772  ;;  %v908_v38 = vsel %vm902_vm8, %v891_v29, %v1770_v57  ;;  %v1660_v1 = vunpack.i.h.bf16 %v2589_v18 }
 0x1a0   :  { %v892_v35 = vsel %vm106_vm0, %v876_v6, %v1704_v42  ;;  %v893_v47 = vsel %vm106_vm0, %v877_v39, %v1705_v19  ;;  %1573 = vmatmul.mubr.msk.bf16.vlgmr.msra.gmra.mrb[12].mxu1 %vm1021_vm12, %v971_v2  ;;  %v1775_v16 = vunpack.i.h.bf16 %v1773_v22  ;;  %v1774_v45 = vunpack.i.l.bf16 %v1773_v22 }
 0x1a1   :  { %v909_v30 = vsel %vm902_vm8, %v892_v35, %v1709_v31  ;;  %v910_v10 = vsel %vm902_vm8, %v893_v47, %v1710_v50  ;;  %v1659_v8 = vunpack.i.l.bf16 %v2589_v18  ;;  %v1720_v48 = vunpack.i.h.bf16 %v2601_v5 }
 0x1a2   :  { %v926_v19 = vsel %vm919_vm9, %v909_v30, %v1639_v32  ;;  %v927_v42 = vsel %vm919_vm9, %v910_v10, %v1640_v52  ;;  %v1719_v50 = vunpack.i.l.bf16 %v2601_v5  ;;  %v925_v32 = vsel %vm919_vm9, %v908_v38, %v1660_v1  ;;  %v1455_v5 = vld [vmem:[%s3003_s5] ss:$0 sm:$0xff] }
 0x1a3   :  { %v2740_v7 = vpop.permute.xlu1 %1797  ;;  %v1778_v33 = vpop.permute.xlu0 %1777  ;;  %v943_v26 = vsel %vm936_vm10, %v926_v19, %v1714_v60  ;;  %v944_v18 = vsel %vm936_vm10, %v927_v42, %v1715_v0  ;;  %v924_v12 = vsel %vm919_vm9, %v907_v63, %v1659_v8  ;;  %v942_v51 = vsel %vm936_vm10, %v925_v32, %v1775_v16 }
 0x1a4   :  { %v1780_v11 = vunpack.i.h.bf16 %v1778_v33  ;;  %v1779_v41 = vunpack.i.l.bf16 %v1778_v33  ;;  %v941_v31 = vsel %vm936_vm10, %v924_v12, %v1774_v45  ;;  %v960_v21 = vsel %vm953_vm11, %v943_v26, %v1719_v50 }
 0x1a5   :  { %v961_v36 = vsel %vm953_vm11, %v944_v18, %v1720_v48 }
 0x1a6   :  { %v958_v46 = vsel %vm953_vm11, %v941_v31, %v1779_v41  ;;  %v959_v24 = vsel %vm953_vm11, %v942_v51, %v1780_v11  ;;  %v973_v25 = vpack.c.bf16 %v961_v36, %v960_v21  ;;  %v1799_v41 = vunpack.i.l.bf16 %v2740_v7 }
 0x1a7   :  { %v972_v20 = vpack.c.bf16 %v959_v24, %v958_v46  ;;  %v2756_v55 = vpop.permute.xlu1 %1802  ;;  %v1788_v27 = vpop.permute.xlu0 %1787 }
 0x1a8   :  { %v1790_v49 = vunpack.i.h.bf16 %v1788_v27  ;;  %v1789_v4 = vunpack.i.l.bf16 %v1788_v27  ;;  %v1804_v36 = vunpack.i.l.bf16 %v2756_v55 }
 0x1a9   :  { %1576 = vmatprep.mubr.msk.bf16.mxu1 %vm1021_vm12, %v972_v20 }
 0x1aa   :  { %1577 = vmatmul.mubr.msk.bf16.gmra.mrb[16].mxu1 %vm1021_vm12, %v973_v25  ;;  %v878_v38 = vsel %vm869_vm7, %v2627_v13, %v1789_v4 }
 0x1ab   :  { %v2760_v14 = vpop.permute.xlu1 %1807  ;;  %v1793_v57 = vpop.permute.xlu0 %1792 }
 0x1ac   :  { %v1795_v19 = vunpack.i.h.bf16 %v1793_v57  ;;  %v1794_v42 = vunpack.i.l.bf16 %v1793_v57 }
 0x1af   :  { %v2762_v44 = vpop.permute.xlu1 %1812  ;;  %v1823_v54 = vpop.permute.xlu0 %1822 }
 0x1b0   :  { %v1824_v37 = vunpack.i.l.bf16 %v1823_v54  ;;  %v1825_v33 = vunpack.i.h.bf16 %v1823_v54  ;;  %v848_v54 = vsel %vm837_vm5, %v2277_v58, %v1799_v41 }
 0x1b3   :  { %v1818_v40 = vpop.permute.xlu1 %1817  ;;  %v1828_v59 = vpop.permute.xlu0 %1827 }
 0x1b4   :  { %v1819_v43 = vunpack.i.l.bf16 %v1818_v40  ;;  %v1830_v6 = vunpack.i.h.bf16 %v1828_v59  ;;  %v1829_v39 = vunpack.i.l.bf16 %v1828_v59  ;;  %v1820_v47 = vunpack.i.h.bf16 %v1818_v40 }
 0x1b5   :  { %v1809_v40 = vunpack.i.l.bf16 %v2760_v14  ;;  %v864_v59 = vsel %vm853_vm6, %v848_v54, %v1804_v36 }
 0x1b6   :  { %v846_v60 = vsel %vm837_vm5, %v2283_v62, %v1819_v43  ;;  %v894_v10 = vsel %vm106_vm0, %v878_v38, %v1829_v39  ;;  %v847_v50 = vsel %vm837_vm5, %v2298_v53, %v1820_v47  ;;  %v1784_v53 = vunpack.i.l.bf16 %v2721_v34 }
 0x1b7   :  { %v862_v15 = vsel %vm853_vm6, %v846_v60, %v1824_v37  ;;  %v2767_v23 = vpop.permute.xlu1 %1847  ;;  %v1833_v29 = vpop.permute.xlu0 %1832  ;;  %v863_v31 = vsel %vm853_vm6, %v847_v50, %v1825_v33  ;;  %v1810_v43 = vunpack.i.h.bf16 %v2760_v14  ;;  %v1785_v37 = vunpack.i.h.bf16 %v2721_v34 }
 0x1b8   :  { %v879_v2 = vsel %vm869_vm7, %v862_v15, %v1790_v49  ;;  %v1835_v22 = vunpack.i.h.bf16 %v1833_v29  ;;  %v1834_v35 = vunpack.i.l.bf16 %v1833_v29  ;;  %v880_v57 = vsel %vm869_vm7, %v863_v31, %v1784_v53 }
 0x1b9   :  { %v895_v63 = vsel %vm106_vm0, %v879_v2, %v1830_v6  ;;  %v1815_v49 = vunpack.i.h.bf16 %v2762_v44  ;;  %v896_v60 = vsel %vm106_vm0, %v880_v57, %v1809_v40  ;;  %v1814_v29 = vunpack.i.l.bf16 %v2762_v44 }
 0x1ba   :  { %v911_v16 = vsel %vm902_vm8, %v894_v10, %v1834_v35  ;;  %v912_v45 = vsel %vm902_vm8, %v895_v63, %v1835_v22  ;;  %v881_v58 = vsel %vm869_vm7, %v864_v59, %v1785_v37  ;;  %v1850_v6 = vunpack.i.h.bf16 %v2767_v23 }
 0x1bb   :  { %v2773_v30 = vpop.permute.xlu1 %1852  ;;  %v1838_v62 = vpop.permute.xlu0 %1837  ;;  %v928_v18 = vsel %vm919_vm9, %v911_v16, %v1794_v42  ;;  %v929_v12 = vsel %vm919_vm9, %v912_v45, %v1795_v19  ;;  %v1849_v39 = vunpack.i.l.bf16 %v2767_v23  ;;  %v897_v2 = vsel %vm106_vm0, %v881_v58, %v1810_v43 }
 0x1bc   :  { %v1840_v1 = vunpack.i.h.bf16 %v1838_v62  ;;  %v1839_v8 = vunpack.i.l.bf16 %v1838_v62  ;;  %v913_v14 = vsel %vm902_vm8, %v896_v60, %v1814_v29  ;;  %v914_v34 = vsel %vm902_vm8, %v897_v2, %v1815_v49 }
 0x1bd   :  { %v930_v44 = vsel %vm919_vm9, %v913_v14, %v1849_v39  ;;  %v931_v10 = vsel %vm919_vm9, %v914_v34, %v1850_v6  ;;  %v1800_v50 = vunpack.i.h.bf16 %v2740_v7  ;;  %v1805_v33 = vunpack.i.h.bf16 %v2756_v55 }
 0x1be   :  { %v945_v51 = vsel %vm936_vm10, %v928_v18, %v1839_v8  ;;  %v946_v21 = vsel %vm936_vm10, %v929_v12, %v1840_v1  ;;  %v1855_v31 = vunpack.i.h.bf16 %v2773_v30 }
 0x1bf   :  { %v2780_v26 = vpop.permute.xlu1 %730  ;;  %v1843_v13 = vpop.permute.xlu0 %1842  ;;  %v849_v7 = vsel %vm837_vm5, %v2287_v9, %v1800_v50 }
 0x1c0   :  { %v1845_v32 = vunpack.i.h.bf16 %v1843_v13  ;;  %v1844_v11 = vunpack.i.l.bf16 %v1843_v13  ;;  %v865_v55 = vsel %vm853_vm6, %v849_v7, %v1805_v33 }
 0x1c2   :  { %v962_v46 = vsel %vm953_vm11, %v945_v51, %v1844_v11  ;;  %v963_v24 = vsel %vm953_vm11, %v946_v21, %v1845_v32  ;;  %v1854_v21 = vunpack.i.l.bf16 %v2773_v30 }
 0x1c3   :  { %v974_v20 = vpack.c.bf16 %v963_v24, %v962_v46  ;;  %v435_v27 = vpop.permute.xlu1 %434  ;;  %v2792_v25 = vpop.permute.xlu0 %1857 }
 0x1c4   :  { %v852_v13 = vsel %vm837_vm5, %v2303_v3, %v435_v27  ;;  %v1859_v18 = vunpack.i.l.bf16 %v2792_v25  ;;  %v1860_v53 = vunpack.i.h.bf16 %v2792_v25 }
 0x1c5   :  { %1580 = vmatprep.mubr.msk.bf16.mxu1 %vm1021_vm12, %v974_v20 }
 0x1c6   :  { %v882_v36 = vsel %vm869_vm7, %v865_v55, %v1859_v18 }
 0x1c7   :  { %v526_v4 = vpop.permute.xlu1 %525  ;;  %v2804_v15 = vpop.permute.xlu0 %1862 }
 0x1c8   :  { %v868_v12 = vsel %vm853_vm6, %v852_v13, %v526_v4  ;;  %v1865_v59 = vunpack.i.h.bf16 %v2804_v15 }
 0x1c9   :  { %v885_v3 = vsel %vm869_vm7, %v868_v12, %v1855_v31  ;;  %v1171_v12 = vld [vmem:[%s3002_s3] sm:$0xf] }
 0x1ca   :  { %1611 = vmatprep.subr.msk.bf16.mxu0 %vm1046_vm4, %v1171_v12 }
 0x1cb   :  { %v1868_v22 = vpop.permute.xlu1 %1867  ;;  %v1873_v35 = vpop.permute.xlu0 %1872 }
 0x1cc   :  { %v1870_v47 = vunpack.i.h.bf16 %v1868_v22  ;;  %v1869_v63 = vunpack.i.l.bf16 %v1868_v22  ;;  %v1875_v38 = vunpack.i.h.bf16 %v1873_v35  ;;  %v1874_v62 = vunpack.i.l.bf16 %v1873_v35 }
 0x1ce   :  { %v947_v16 = vsel %vm936_vm10, %v930_v44, %v1869_v63  ;;  %v948_v23 = vsel %vm936_vm10, %v931_v10, %v1870_v47 }
 0x1cf   :  { %v965_v45 = vsel %vm953_vm11, %v948_v23, %v1875_v38  ;;  %v964_v1 = vsel %vm953_vm11, %v947_v16, %v1874_v62  ;;  %v1878_v8 = vpop.permute.xlu1 %1877  ;;  %v1893_v19 = vpop.permute.xlu0 %1892  ;;  %v1864_v62 = vunpack.i.l.bf16 %v2804_v15 }
 0x1d0   :  { %v975_v42 = vpack.c.bf16 %v965_v45, %v964_v1  ;;  %v1880_v32 = vunpack.i.h.bf16 %v1878_v8  ;;  %v1879_v43 = vunpack.i.l.bf16 %v1878_v8  ;;  %v1895_v30 = vunpack.i.h.bf16 %v1893_v19 }
 0x1d1   :  { %v1894_v37 = vunpack.i.l.bf16 %v1893_v19 }
 0x1d2   :  { %1581 = vmatmul.mubr.msk.bf16.gmra.mrb[20].mxu1 %vm1021_vm12, %v975_v42  ;;  %v901_v46 = vsel %vm106_vm0, %v885_v3, %v1880_v32  ;;  %v1204_v32 = vsel %vm1046_vm4, %v1171_v12, 0 }
 0x1d3   :  { %v1883_v11 = vpop.permute.xlu1 %1882  ;;  %v1898_v41 = vpop.permute.xlu0 %1897  ;;  %1589 = vmatpush3.bf16.msra.mxu0 %v1204_v32 }
 0x1d4   :  { %v1885_v51 = vunpack.i.h.bf16 %v1883_v11  ;;  %v1899_v24 = vunpack.i.l.bf16 %v1898_v41  ;;  %v1884_v49 = vunpack.i.l.bf16 %v1883_v11  ;;  %v1900_v60 = vunpack.i.h.bf16 %v1898_v41 }
 0x1d6   :  { %v918_v57 = vsel %vm902_vm8, %v901_v46, %v1885_v51  ;;  %v898_v29 = vsel %vm106_vm0, %v882_v36, %v1899_v24 }
 0x1d7   :  { %v1888_v20 = vpop.permute.xlu1 %1887  ;;  %v1903_v27 = vpop.permute.xlu0 %1902  ;;  %v935_v14 = vsel %vm919_vm9, %v918_v57, %v1640_v52 }
 0x1d8   :  { %v1890_v54 = vunpack.i.h.bf16 %v1888_v20  ;;  %v1889_v40 = vunpack.i.l.bf16 %v1888_v20  ;;  %v1904_v9 = vunpack.i.l.bf16 %v1903_v27  ;;  %v1905_v34 = vunpack.i.h.bf16 %v1903_v27 }
 0x1d9   :  { %v952_v23 = vsel %vm936_vm10, %v935_v14, %v1715_v0 }
 0x1da   :  { %v851_v25 = vsel %vm837_vm5, %v2417_v56, %v1890_v54  ;;  %v850_v4 = vsel %vm837_vm5, %v2327_v17, %v1889_v40  ;;  %v915_v56 = vsel %vm902_vm8, %v898_v29, %v1904_v9  ;;  %v969_v61 = vsel %vm953_vm11, %v952_v23, %v1720_v48 }
 0x1db   :  { %v866_v58 = vsel %vm853_vm6, %v850_v4, %v1894_v37  ;;  %v867_v6 = vsel %vm853_vm6, %v851_v25, %v1895_v30  ;;  %v776_v39 = vpop.permute.xlu1 %775  ;;  %v1908_v2 = vpop.permute.xlu0 %1907  ;;  %v932_v8 = vsel %vm919_vm9, %v915_v56, %v1864_v62 }
 0x1dc   :  { %v883_v22 = vsel %vm869_vm7, %v866_v58, %v1860_v53  ;;  %v884_v35 = vsel %vm869_vm7, %v867_v6, %v1854_v21  ;;  %v1910_v63 = vunpack.i.h.bf16 %v1908_v2  ;;  %v1909_v38 = vunpack.i.l.bf16 %v1908_v2 }
 0x1dd   :  { %v899_v17 = vsel %vm106_vm0, %v883_v22, %v1900_v60  ;;  %v900_v47 = vsel %vm106_vm0, %v884_v35, %v1879_v43 }
 0x1de   :  { %v916_v44 = vsel %vm902_vm8, %v899_v17, %v1905_v34  ;;  %v917_v28 = vsel %vm902_vm8, %v900_v47, %v1884_v49  ;;  %v949_v42 = vsel %vm936_vm10, %v932_v8, %v1909_v38 }
 0x1df   :  { %v934_v52 = vsel %vm919_vm9, %v917_v28, %v2780_v26  ;;  %v933_v10 = vsel %vm919_vm9, %v916_v44, %v1865_v59  ;;  %v821_v16 = vpop.permute.xlu1 %820  ;;  %v1913_v45 = vpop.permute.xlu0 %1912 }
 0x1e0   :  { %v951_v1 = vsel %vm936_vm10, %v934_v52, %v776_v39  ;;  %v1915_v15 = vunpack.i.h.bf16 %v1913_v45  ;;  %v1914_v19 = vunpack.i.l.bf16 %v1913_v45  ;;  %v950_v50 = vsel %vm936_vm10, %v933_v10, %v1910_v63 }
 0x1e1   :  { %v968_v26 = vsel %vm953_vm11, %v951_v1, %v821_v16 }
 0x1e2   :  { %v966_v33 = vsel %vm953_vm11, %v949_v42, %v1914_v19  ;;  %v967_v13 = vsel %vm953_vm11, %v950_v50, %v1915_v15  ;;  %v977_v18 = vpack.c.bf16 %v969_v61, %v968_v26 }
 0x1e3   :  { %v976_v0 = vpack.c.bf16 %v967_v13, %v966_v33  ;;  %v2892_v33 = vld [vmem:[%s3004_s6] ss:$0 sm:$0xff]  ;;  %v1939_v13 = vld [vmem:[%s2999_s0 + $0x8] sm:$0xff]  }
 0x1e4   :  { %v1305_v61 = vunpack.c.l.bf16 %v1939_v13 }
 0x1e5   :  { %1584 = vmatprep.mubr.msk.bf16.mxu1 %vm1021_vm12, %v976_v0  ;;  %v1940_v0 = vld [vmem:[%s2999_s0] sm:$0xff]  }
 0x1e6   :  { %1585 = vmatmul.mubr.msk.bf16.gmra.mrb[24].mxu1 %vm1021_vm12, %v977_v18  ;;  %v1303_v18 = vunpack.c.l.bf16 %v1940_v0 }
 0x273   :  { %v1574_v48 = vpop.f32.mrb[12].mxu1 }
 0x274   :  { %v1093_v11 = vadd.f32 %v1574_v48, %v1455_v5  ;;  %v1084_v41 = vpop.f32.mrb[13].mxu1  ;;  %v1306_v48 = vunpack.c.h.bf16 %v1939_v13 }
 0x275   :  { %v1085_v31 = vadd.f32 %v1455_v5, %v1084_v41  ;;  %v1575_v51 = vpop.f32.mrb[14].mxu1 }
 0x276   :  { %v1096_v7 = vadd.f32 %v1575_v51, %v1455_v5  ;;  %v1087_v55 = vpop.f32.mrb[15].mxu1  ;;  %v1149_v3 = vmax.f32 %v1093_v11, 0.0  ;;  %v1304_v11 = vunpack.c.h.bf16 %v1940_v0 }
 0x277   :  { %v1088_v21 = vadd.f32 %v1455_v5, %v1087_v55  ;;  %v1147_v36 = vmax.f32 %v1085_v31, 0.0 }
 0x278   :  { %v1150_v53 = vmax.f32 %v1096_v7, 0.0 }
 0x279   :  { %v1148_v46 = vmax.f32 %v1088_v21, 0.0 }
 0x27a   :  { %v1164_v24 = vpack.c.bf16 %v1150_v53, %v1149_v3 }
 0x27b   :  { %v1163_v20 = vpack.c.bf16 %v1148_v46, %v1147_v36 }
 0x27d   :  { %v1578_v27 = vpop.f32.mrb[16].mxu1  ;;  %1590 = vmatprep.mubr.msk.bf16.mxu0 %vm837_vm5, %v1163_v20 }
 0x27e   :  { %v1109_v57 = vadd.f32 %v1578_v27, %v1455_v5  ;;  %v1100_v54 = vpop.f32.mrb[17].mxu1  ;;  %1591 = vmatmul.mubr.msk.bf16.vlgmr.msra.gmra.mrb[4].mxu0 %vm837_vm5, %v1164_v24 }
 0x27f   :  { %v1101_v40 = vadd.f32 %v1455_v5, %v1100_v54  ;;  %v1579_v9 = vpop.f32.mrb[18].mxu1 }
 0x280   :  { %v1112_v59 = vadd.f32 %v1579_v9, %v1455_v5  ;;  %v1103_v43 = vpop.f32.mrb[19].mxu1  ;;  %v1153_v37 = vmax.f32 %v1109_v57, 0.0 }
 0x281   :  { %v1104_v30 = vadd.f32 %v1455_v5, %v1103_v43  ;;  %v1151_v60 = vmax.f32 %v1101_v40, 0.0  ;;  %v1941_v40 = vld [vmem:[%s2999_s0 + $0x18] sm:$0xff]  }
 0x282   :  { %v1154_v49 = vmax.f32 %v1112_v59, 0.0  ;;  %v1309_v9 = vunpack.c.l.bf16 %v1941_v40  ;;  %v1942_v59 = vld [vmem:[%s2999_s0 + $0x10] sm:$0xff]  }
 0x283   :  { %v1152_v25 = vmax.f32 %v1104_v30, 0.0  ;;  %v1307_v43 = vunpack.c.l.bf16 %v1942_v59 }
 0x284   :  { %v1166_v4 = vpack.c.bf16 %v1154_v49, %v1153_v37 }
 0x285   :  { %v1165_v29 = vpack.c.bf16 %v1152_v25, %v1151_v60 }
 0x287   :  { %1594 = vmatprep.mubr.msk.bf16.mxu0 %vm837_vm5, %v1165_v29  ;;  %v1308_v29 = vunpack.c.h.bf16 %v1942_v59 }
 0x288   :  { %1595 = vmatmul.mubr.msk.bf16.gmra.mrb[8].mxu0 %vm837_vm5, %v1166_v4  ;;  %v1310_v4 = vunpack.c.h.bf16 %v1941_v40 }
 0x2a5   :  { %v1582_v58 = vpop.f32.mrb[20].mxu1 }
 0x2a6   :  { %v1125_v6 = vadd.f32 %v1582_v58, %v1455_v5  ;;  %v1116_v39 = vpop.f32.mrb[21].mxu1 }
 0x2a7   :  { %v1117_v2 = vadd.f32 %v1455_v5, %v1116_v39  ;;  %v1583_v14 = vpop.f32.mrb[22].mxu1 }
 0x2a8   :  { %v1128_v34 = vadd.f32 %v1583_v14, %v1455_v5  ;;  %v1119_v22 = vpop.f32.mrb[23].mxu1  ;;  %v1157_v35 = vmax.f32 %v1125_v6, 0.0 }
 0x2a9   :  { %v1120_v56 = vadd.f32 %v1455_v5, %v1119_v22  ;;  %v1155_v47 = vmax.f32 %v1117_v2, 0.0 }
 0x2aa   :  { %v1158_v17 = vmax.f32 %v1128_v34, 0.0 }
 0x2ab   :  { %v1156_v63 = vmax.f32 %v1120_v56, 0.0 }
 0x2ac   :  { %v1168_v38 = vpack.c.bf16 %v1158_v17, %v1157_v35 }
 0x2ad   :  { %v1167_v62 = vpack.c.bf16 %v1156_v63, %v1155_v47 }
 0x2af   :  { %1598 = vmatprep.mubr.msk.bf16.mxu0 %vm837_vm5, %v1167_v62 }
 0x2b0   :  { %1599 = vmatmul.mubr.msk.bf16.gmra.mrb[12].mxu0 %vm837_vm5, %v1168_v38 }
 0x2b9   :  { %v1586_v44 = vpop.f32.mrb[24].mxu1 }
 0x2ba   :  { %v1141_v28 = vadd.f32 %v1586_v44, %v1455_v5  ;;  %v1132_v52 = vpop.f32.mrb[25].mxu1 }
 0x2bb   :  { %v1133_v10 = vadd.f32 %v1455_v5, %v1132_v52  ;;  %v1587_v16 = vpop.f32.mrb[26].mxu1 }
 0x2bc   :  { %v1144_v23 = vadd.f32 %v1587_v16, %v1455_v5  ;;  %v1135_v45 = vpop.f32.mrb[27].mxu1  ;;  %v1161_v8 = vmax.f32 %v1141_v28, 0.0 }
 0x2bd   :  { %v1136_v1 = vadd.f32 %v1455_v5, %v1135_v45  ;;  %v1159_v19 = vmax.f32 %v1133_v10, 0.0  ;;  %v1943_v10 = vld [vmem:[%s2999_s0 + $0x28] sm:$0xff]   ;;  %v1944_v45 = vld [vmem:[%s2999_s0 + $0x20] sm:$0xff]  }
 0x2be   :  { %v1162_v15 = vmax.f32 %v1144_v23, 0.0  ;;  %v1313_v16 = vunpack.c.l.bf16 %v1943_v10 }
 0x2bf   :  { %v1160_v42 = vmax.f32 %v1136_v1, 0.0  ;;  %v1311_v1 = vunpack.c.l.bf16 %v1944_v45 }
 0x2c0   :  { %v1170_v50 = vpack.c.bf16 %v1162_v15, %v1161_v8 }
 0x2c1   :  { %v1169_v26 = vpack.c.bf16 %v1160_v42, %v1159_v19  ;;  %v1314_v19 = vunpack.c.h.bf16 %v1943_v10 }
 0x2c3   :  { %1602 = vmatprep.mubr.msk.bf16.mxu0 %vm837_vm5, %v1169_v26  ;;  %v1312_v26 = vunpack.c.h.bf16 %v1944_v45 }
 0x2c4   :  { %1603 = vmatmul.mubr.msk.bf16.gmra.mrb[16].mxu0 %vm837_vm5, %v1170_v50 }
 0x351   :  { %v1592_v12 = vpop.f32.mrb[4].mxu0 }
 0x352   :  { %v1249_v32 = vadd.f32 %v1592_v12, %v2892_v33  ;;  %v1240_v5 = vpop.f32.mrb[5].mxu0 }
 0x353   :  { %v1241_v41 = vadd.f32 %v2892_v33, %v1240_v5  ;;  %v1593_v31 = vpop.f32.mrb[6].mxu0 }
 0x354   :  { %v1321_v51 = vadd.f32 %v1305_v61, %v1249_v32  ;;  %v1252_v7 = vadd.f32 %v1593_v31, %v2892_v33  ;;  %v1243_v55 = vpop.f32.mrb[7].mxu0 }
 0x355   :  { %v1319_v21 = vadd.f32 %v1303_v18, %v1241_v41  ;;  %v1244_v3 = vadd.f32 %v2892_v33, %v1243_v55 }
 0x356   :  { %v1337_v53 = vmax.f32 %v1321_v51, 0.0  ;;  %v1322_v36 = vadd.f32 %v1306_v48, %v1252_v7 }
 0x357   :  { %v1335_v46 = vmax.f32 %v1319_v21, 0.0  ;;  %v1320_v24 = vadd.f32 %v1304_v11, %v1244_v3  ;;  %v1945_v3 = vld [vmem:[%s2999_s0 + $0x38] sm:$0xff]  }
 0x358   :  { %v1496_v20 = vpack.c.bf16 %v1337_v53, %v1337_v53  ;;  %v1338_v27 = vmax.f32 %v1322_v36, 0.0  ;;  %v1317_v53 = vunpack.c.l.bf16 %v1945_v3 }
 0x359   :  { %v1494_v57 = vpack.c.bf16 %v1335_v46, %v1335_v46  ;;  %v1336_v54 = vmax.f32 %v1320_v24, 0.0  ;;  %v1946_v46 = vld [vmem:[%s2999_s0 + $0x30] sm:$0xff]  }
 0x35a   :  { %1418 = vst.msk [vmem:[%s3005_s7 + $0x8] sm:$0xf] %vm1415_vm13, %v1496_v20  ;;  %v1497_v30 = vpack.c.bf16 %v1338_v27, %v1338_v27  ;;  %v1315_v24 = vunpack.c.l.bf16 %v1946_v46 }
 0x35b   :  { %v1596_v37 = vpop.f32.mrb[8].mxu0  ;;  %1416 = vst.msk [vmem:[%s3005_s7] sm:$0xf] %vm1415_vm13, %v1494_v57  ;;  %v1495_v49 = vpack.c.bf16 %v1336_v54, %v1336_v54  ;;  %v1318_v57 = vunpack.c.h.bf16 %v1945_v3 }
 0x35c   :  { %v1265_v60 = vadd.f32 %v1596_v37, %v2892_v33  ;;  %v1256_v25 = vpop.f32.mrb[9].mxu0  ;;  %1419 = vst.msk [vmem:[%s3005_s7 + $0xc] sm:$0xf] %vm1415_vm13, %v1497_v30 }
 0x35d   :  { %v1257_v58 = vadd.f32 %v2892_v33, %v1256_v25  ;;  %v1597_v6 = vpop.f32.mrb[10].mxu0  ;;  %1417 = vst.msk [vmem:[%s3005_s7 + $0x4] sm:$0xf] %vm1415_vm13, %v1495_v49 }
 0x35e   :  { %v1325_v39 = vadd.f32 %v1309_v9, %v1265_v60  ;;  %v1268_v2 = vadd.f32 %v1597_v6, %v2892_v33  ;;  %v1259_v14 = vpop.f32.mrb[11].mxu0  ;;  %v1316_v9 = vunpack.c.h.bf16 %v1946_v46 }
 0x35f   :  { %v1323_v34 = vadd.f32 %v1307_v43, %v1257_v58  ;;  %v1260_v22 = vadd.f32 %v2892_v33, %v1259_v14 }
 0x360   :  { %v1341_v56 = vmax.f32 %v1325_v39, 0.0  ;;  %v1326_v35 = vadd.f32 %v1310_v4, %v1268_v2 }
 0x361   :  { %v1339_v17 = vmax.f32 %v1323_v34, 0.0  ;;  %v1324_v47 = vadd.f32 %v1308_v29, %v1260_v22 }
 0x362   :  { %v1500_v63 = vpack.c.bf16 %v1341_v56, %v1341_v56  ;;  %v1342_v38 = vmax.f32 %v1326_v35, 0.0 }
 0x363   :  { %v1498_v62 = vpack.c.bf16 %v1339_v17, %v1339_v17  ;;  %v1340_v44 = vmax.f32 %v1324_v47, 0.0 }
 0x364   :  { %1422 = vst.msk [vmem:[%s3005_s7 + $0x18] sm:$0xf] %vm1415_vm13, %v1500_v63  ;;  %v1501_v28 = vpack.c.bf16 %v1342_v38, %v1342_v38 }
 0x365   :  { %1420 = vst.msk [vmem:[%s3005_s7 + $0x10] sm:$0xf] %vm1415_vm13, %v1498_v62  ;;  %v1499_v52 = vpack.c.bf16 %v1340_v44, %v1340_v44 }
 0x366   :  { %1423 = vst.msk [vmem:[%s3005_s7 + $0x1c] sm:$0xf] %vm1415_vm13, %v1501_v28 }
 0x367   :  { %1421 = vst.msk [vmem:[%s3005_s7 + $0x14] sm:$0xf] %vm1415_vm13, %v1499_v52 }
 0x383   :  { %v1600_v23 = vpop.f32.mrb[12].mxu0 }
 0x384   :  { %v1281_v8 = vadd.f32 %v1600_v23, %v2892_v33  ;;  %v1272_v15 = vpop.f32.mrb[13].mxu0 }
 0x385   :  { %v1273_v42 = vadd.f32 %v2892_v33, %v1272_v15  ;;  %v1601_v50 = vpop.f32.mrb[14].mxu0 }
 0x386   :  { %v1329_v13 = vadd.f32 %v1313_v16, %v1281_v8  ;;  %v1284_v61 = vadd.f32 %v1601_v50, %v2892_v33  ;;  %v1275_v0 = vpop.f32.mrb[15].mxu0 }
 0x387   :  { %v1327_v18 = vadd.f32 %v1311_v1, %v1273_v42  ;;  %v1276_v12 = vadd.f32 %v2892_v33, %v1275_v0 }
 0x388   :  { %v1345_v32 = vmax.f32 %v1329_v13, 0.0  ;;  %v1330_v5 = vadd.f32 %v1314_v19, %v1284_v61 }
 0x389   :  { %v1343_v48 = vmax.f32 %v1327_v18, 0.0  ;;  %v1328_v11 = vadd.f32 %v1312_v26, %v1276_v12 }
 0x38a   :  { %v1504_v41 = vpack.c.bf16 %v1345_v32, %v1345_v32  ;;  %v1346_v31 = vmax.f32 %v1330_v5, 0.0 }
 0x38b   :  { %v1502_v51 = vpack.c.bf16 %v1343_v48, %v1343_v48  ;;  %v1344_v7 = vmax.f32 %v1328_v11, 0.0 }
 0x38c   :  { %1426 = vst.msk [vmem:[%s3005_s7 + $0x28] sm:$0xf] %vm1415_vm13, %v1504_v41  ;;  %v1505_v55 = vpack.c.bf16 %v1346_v31, %v1346_v31 }
 0x38d   :  { %1424 = vst.msk [vmem:[%s3005_s7 + $0x20] sm:$0xf] %vm1415_vm13, %v1502_v51  ;;  %v1503_v21 = vpack.c.bf16 %v1344_v7, %v1344_v7 }
 0x38e   :  { %1427 = vst.msk [vmem:[%s3005_s7 + $0x2c] sm:$0xf] %vm1415_vm13, %v1505_v55 }
 0x38f   :  { %1425 = vst.msk [vmem:[%s3005_s7 + $0x24] sm:$0xf] %vm1415_vm13, %v1503_v21 }
 0x397   :  { %v1604_v36 = vpop.f32.mrb[16].mxu0 }
 0x398   :  { %v1297_v20 = vadd.f32 %v1604_v36, %v2892_v33  ;;  %v1288_v27 = vpop.f32.mrb[17].mxu0 }
 0x399   :  { %v1289_v54 = vadd.f32 %v2892_v33, %v1288_v27  ;;  %v1605_v40 = vpop.f32.mrb[18].mxu0 }
 0x39a   :  { %v1333_v59 = vadd.f32 %v1317_v53, %v1297_v20  ;;  %v1300_v43 = vadd.f32 %v1605_v40, %v2892_v33  ;;  %v1291_v30 = vpop.f32.mrb[19].mxu0 }
 0x39b   :  { %v1331_v37 = vadd.f32 %v1315_v24, %v1289_v54  ;;  %v1292_v49 = vadd.f32 %v2892_v33, %v1291_v30 }
 0x39c   :  { %v1349_v60 = vmax.f32 %v1333_v59, 0.0  ;;  %v1334_v25 = vadd.f32 %v1318_v57, %v1300_v43 }
 0x39d   :  { %v1347_v4 = vmax.f32 %v1331_v37, 0.0  ;;  %v1332_v29 = vadd.f32 %v1316_v9, %v1292_v49 }
 0x39e   :  { %v1508_v58 = vpack.c.bf16 %v1349_v60, %v1349_v60  ;;  %v1350_v6 = vmax.f32 %v1334_v25, 0.0 }
 0x39f   :  { %v1506_v39 = vpack.c.bf16 %v1347_v4, %v1347_v4  ;;  %v1348_v2 = vmax.f32 %v1332_v29, 0.0 }
 0x3a0   :  { %1430 = vst.msk [vmem:[%s3005_s7 + $0x38] sm:$0xf] %vm1415_vm13, %v1508_v58  ;;  %v1509_v14 = vpack.c.bf16 %v1350_v6, %v1350_v6 }
 0x3a1   :  { %1428 = vst.msk [vmem:[%s3005_s7 + $0x30] sm:$0xf] %vm1415_vm13, %v1506_v39  ;;  %v1507_v33 = vpack.c.bf16 %v1348_v2, %v1348_v2 }
 0x3a2   :  { %1431 = vst.msk [vmem:[%s3005_s7 + $0x3c] sm:$0xf] %vm1415_vm13, %v1509_v14 }
 0x3a3   :  { %1429 = vst.msk [vmem:[%s3005_s7 + $0x34] sm:$0xf] %vm1415_vm13, %v1507_v33 }

</bundles_post_ra>
